<compile_context>
chip_gen: v6e
topology: v6e:2x2x1
jax: 0.10.0
libtpu: 0.0.40
codegen_flags: <defaults>
</compile_context>

<pallas_src>
import functools

import jax
import jax.numpy as jnp
from jax.experimental import pallas as pl
from jax.experimental.pallas import tpu as pltpu

_LANES = 128
_SUBLANES = 8
_DEFAULT_BLOCK_ROWS = 2048  # (2048, 128) f32 block == 1 MiB per input


def _round_up(x, m):
    return ((x + m - 1) // m) * m


def _l1_kernel(o_ref, t_ref, out_ref, *, block_rows, bpc, n_rows, needs_mask):
    c = pl.program_id(0)   # core / outer parallel axis
    i = pl.program_id(1)   # sequential reduction axis

    @pl.when(i == 0)
    def _():
        out_ref[...] = jnp.zeros_like(out_ref)

    o = o_ref[...].astype(jnp.float32)
    t = t_ref[...].astype(jnp.float32)
    d = jnp.abs(o - t)

    if needs_mask:
        # Zero out rows past the true end of the data (ragged last block).
        row_base = (c * bpc + i) * block_rows
        row_ids = row_base + jax.lax.broadcasted_iota(
            jnp.int32, (block_rows, _LANES), 0)
        d = jnp.where(row_ids < n_rows, d, 0.0)

    # VPU-only partial reduce: (block_rows, 128) -> (8, 128).
    part = d.reshape(block_rows // _SUBLANES, _SUBLANES, _LANES).sum(axis=0)
    out_ref[...] += part[None]


def voxel_l1(outputs, targets):
    """Pallas implementation of VoxelL1.forward."""
    assert outputs.shape == targets.shape
    batch = targets.shape[0]
    n = outputs.size

    o_flat = jnp.ravel(outputs)
    t_flat = jnp.ravel(targets)

    # Rare fallback (never hit for [B, 64, 64, 64] voxel grids): zero-pad the
    # tail so the flat array reshapes into 128 lanes; |0 - 0| contributes 0.
    lane_pad = (-n) % _LANES
    if lane_pad:
        o_flat = jnp.pad(o_flat, (0, lane_pad))
        t_flat = jnp.pad(t_flat, (0, lane_pad))

    rows = o_flat.size // _LANES
    o2d = o_flat.reshape(rows, _LANES)
    t2d = t_flat.reshape(rows, _LANES)

    block_rows = min(_DEFAULT_BLOCK_ROWS, _round_up(rows, _SUBLANES))
    total_blocks = -(-rows // block_rows)
    needs_mask = (rows % block_rows) != 0

    # Split the stream across both TensorCores (v7x) when it divides evenly;
    # on 1-TC chips the "parallel" axis just runs sequentially.
    ncores = 2 if (total_blocks % 2 == 0) else 1
    bpc = total_blocks // ncores

    kernel = functools.partial(
        _l1_kernel,
        block_rows=block_rows,
        bpc=bpc,
        n_rows=rows,
        needs_mask=needs_mask,
    )

    partials = pl.pallas_call(
        kernel,
        out_shape=jax.ShapeDtypeStruct((ncores, _SUBLANES, _LANES), jnp.float32),
        grid_spec=pltpu.PrefetchScalarGridSpec(
            num_scalar_prefetch=0,
            grid=(ncores, bpc),
            in_specs=[
                pl.BlockSpec((block_rows, _LANES), lambda c, i: (c * bpc + i, 0)),
                pl.BlockSpec((block_rows, _LANES), lambda c, i: (c * bpc + i, 0)),
            ],
            out_specs=pl.BlockSpec((1, _SUBLANES, _LANES), lambda c, i: (c, 0, 0)),
        ),
        compiler_params=pltpu.CompilerParams(
            dimension_semantics=("parallel", "arbitrary")),
    )(o2d, t2d)

    # Single cross-lane reduce of the tiny per-core accumulators + batch norm.
    return jnp.sum(partials) / batch


def _reference(outputs, targets):
    return jnp.sum(jnp.abs(targets.astype(jnp.float32)
                           - outputs.astype(jnp.float32))) / targets.shape[0]


if __name__ == "__main__":
    key = jax.random.PRNGKey(0)
    k1, k2 = jax.random.split(key)

    # Voxel-grid shaped inputs as the module implies: [batch, 64, 64, 64].
    B, D = 2, 64
    outputs = jax.random.uniform(k1, (B, D, D, D), jnp.float32)
    targets = (jax.random.uniform(k2, (B, D, D, D)) > 0.5).astype(jnp.float32)

    loss = voxel_l1(outputs, targets)
    loss = jax.block_until_ready(loss)

    ref = _reference(outputs, targets)
    assert jnp.allclose(loss, ref, rtol=1e-4, atol=1e-2), (loss, ref)

    print("KERNEL_OK")
</pallas_src>

<mosaic_0001>
module attributes {stable_mosaic.version = 11 : i64} {
  func.func @_l1_kernel(%arg0: i32, %arg1: i32, %arg2: memref<2048x128xf32, #tpu.memory_space<vmem>>, %arg3: memref<2048x128xf32, #tpu.memory_space<vmem>>, %arg4: memref<1x8x128xf32, #tpu.memory_space<vmem>>) attributes {dimension_semantics = [#tpu.dimension_semantics<parallel>, #tpu.dimension_semantics<arbitrary>], iteration_bounds = array<i64: 2, 1>, scalar_prefetch = 0 : i64, scratch_operands = 0 : i64, tpu.core_type = #tpu.core_type<tc>, window_params = [{transform_indices = @transform_0, window_bounds = array<i64: 2048, 128>}, {transform_indices = @transform_1, window_bounds = array<i64: 2048, 128>}, {transform_indices = @transform_2, window_bounds = array<i64: 1, 8, 128>}]} {
    %c0_i32 = arith.constant 0 : i32
    %0 = arith.cmpi eq, %arg1, %c0_i32 : i32
    %1 = arith.extui %0 : i1 to i32
    %c0_i32_0 = arith.constant 0 : i32
    %2 = arith.cmpi ne, %1, %c0_i32_0 : i32
    scf.if %2 {
      %cst_10 = arith.constant 0.000000e+00 : f32
      %13 = vector.broadcast %cst_10 : f32 to vector<1x8x128xf32>
      %c0_11 = arith.constant 0 : index
      %c0_12 = arith.constant 0 : index
      %c0_13 = arith.constant 0 : index
      %14 = vector.load %arg4[%c0_11, %c0_12, %c0_13] : memref<1x8x128xf32, #tpu.memory_space<vmem>>, vector<1x8x128xf32>
      tpu.vector_store %arg4[%c0_11, %c0_12, %c0_13], %13 {strides = array<i32>} : memref<1x8x128xf32, #tpu.memory_space<vmem>>, vector<1x8x128xf32>,
    } else {
    }
    %c0 = arith.constant 0 : index
    %c0_1 = arith.constant 0 : index
    %3 = vector.load %arg2[%c0, %c0_1] : memref<2048x128xf32, #tpu.memory_space<vmem>>, vector<2048x128xf32>
    %c0_2 = arith.constant 0 : index
    %c0_3 = arith.constant 0 : index
    %4 = vector.load %arg3[%c0_2, %c0_3] : memref<2048x128xf32, #tpu.memory_space<vmem>>, vector<2048x128xf32>
    %5 = arith.subf %3, %4 : vector<2048x128xf32>
    %6 = math.absf %5 : vector<2048x128xf32>
    %7 = vector.shape_cast %6 : vector<2048x128xf32> to vector<256x8x128xf32>
    %cst = arith.constant dense<0.000000e+00> : vector<8x128xf32>
    %8 = vector.multi_reduction <add>, %7, %cst [0] : vector<256x8x128xf32> to vector<8x128xf32>
    %c0_4 = arith.constant 0 : index
    %c0_5 = arith.constant 0 : index
    %c0_6 = arith.constant 0 : index
    %9 = vector.load %arg4[%c0_4, %c0_5, %c0_6] : memref<1x8x128xf32, #tpu.memory_space<vmem>>, vector<1x8x128xf32>
    %10 = vector.shape_cast %8 : vector<8x128xf32> to vector<1x8x128xf32>
    %11 = arith.addf %9, %10 : vector<1x8x128xf32>
    %c0_7 = arith.constant 0 : index
    %c0_8 = arith.constant 0 : index
    %c0_9 = arith.constant 0 : index
    %12 = vector.load %arg4[%c0_7, %c0_8, %c0_9] : memref<1x8x128xf32, #tpu.memory_space<vmem>>, vector<1x8x128xf32>
    tpu.vector_store %arg4[%c0_7, %c0_8, %c0_9], %11 {strides = array<i32>} : memref<1x8x128xf32, #tpu.memory_space<vmem>>, vector<1x8x128xf32>,
    return
  }
  func.func @transform_0(%arg0: i32, %arg1: i32) -> (i32, i32) {
    %c1_i32 = arith.constant 1 : i32
    %0 = arith.muli %arg0, %c1_i32 : i32
    %1 = arith.addi %0, %arg1 : i32
    %c0_i32 = arith.constant 0 : i32
    %c0_i32_0 = arith.constant 0 : i32
    return %1, %c0_i32 : i32, i32
  }
  func.func @transform_1(%arg0: i32, %arg1: i32) -> (i32, i32) {
    %c1_i32 = arith.constant 1 : i32
    %0 = arith.muli %arg0, %c1_i32 : i32
    %1 = arith.addi %0, %arg1 : i32
    %c0_i32 = arith.constant 0 : i32
    %c0_i32_0 = arith.constant 0 : i32
    return %1, %c0_i32 : i32, i32
  }
  func.func @transform_2(%arg0: i32, %arg1: i32) -> (i32, i32, i32) {
    %c0_i32 = arith.constant 0 : i32
    %c0_i32_0 = arith.constant 0 : i32
    %c0_i32_1 = arith.constant 0 : i32
    return %arg0, %c0_i32, %c0_i32_0 : i32, i32, i32
  }
}

</mosaic_0001>

<bundles_post_ra>
// kernel: tpu_custom_call.1
= control target key start
LH: loop header
LB: loop body
LE: loop exit
PB: predicated region body
PF: predicated region fallthrough
CT: control target
= control target key end

     0   :  { %7 = vsyncpa [#allocation3], 0  ;;  %s2564_s0 = inlined_call_operand.hbm [shape: f32[4096,128], index: 0, kind: input, shape index: {}]   ;;  %s2565_s1 = inlined_call_operand.hbm [shape: f32[4096,128], index: 1, kind: input, shape index: {}]   ;;  %s2566_s2 = inlined_call_operand.hbm [shape: f32[2,8,128], index: 2, kind: output, shape index: {}]  }
   0x1   :  { %9 = vsyncpa [#allocation3 + $0x1], 0 }
   0x2   :  { %10 = vsyncpa [#allocation6], 0 }
   0x3   :  { %12 = vsyncpa [#allocation6 + $0x1], 0 }
   0x4   :  { %13 = vsyncpa [#allocation4], 0 }
   0x5   :  { %15 = vsyncpa [#allocation4 + $0x1], 0  ;;  %s1880_s9 = smov 0   ;;  %s1882_s10 = smov 0  }
   0x6   :  { %s1884_s11 = smov 0   ;;  %s1886_s12 = smov 0  }
   0x7   :  { %s1888_s13 = smov 0   ;;  %s1890_s14 = smov 0  }
   0x8 LB: > { %s1628_s15 = sadd.s32 4294967295, %s1858_s14   ;;  %s1629_s16 = sadd.s32 4294967294, %s1858_s14   ;;  %s1858_s14 = sphi %s1890_s14, %s21_s14   ;;  %s1854_s13 = sphi %s1888_s13, %s2578_s13   ;;  %s1850_s12 = sphi %s1886_s12, %s2577_s12   ;;  %s1846_s11 = sphi %s1884_s11, %s2576_s11   ;;  %s1842_s10 = sphi %s1882_s10, %s2575_s10   ;;  %s1838_s9 = sphi %s1880_s9, %s2574_s9  }
   0x9   : > { %s33_s17 = sadd.s32 1, %s1854_s13  ;;  %s42_s18 = sadd.s32 1, %s1846_s11 }
   0xa   : > { %p35_p0 = scmp.ge.s32.totalorder %s33_s17, 2  ;;  %p49_p1 = scmp.ne.s32.totalorder %s1846_s11, %s1842_s10 }
   0xb   : > { %p50_p2 = scmp.eq.s32.totalorder %s1858_s14, 0  ;;  %p55_p3 = scmp.ne.s32.totalorder %s1842_s10, %s1838_s9 }
   0xc   : > { %s2580_s17 = smov (%p35_p0, %s33_s17), 0  ;;  %p56_p5 = scmp.eq.s32.totalorder %s1628_s15, 0 }
   0xd   : > { %p1921_p4 = por %p50_p2, %p49_p1  ;;  %s39_s20 = ssub.s32 %s1854_s13, %s2580_s17 }
   0xe   : > { %p107_p6 = scmp.eq.s32.totalorder %s1628_s15, 1  ;;  %p40_p7 = scmp.eq.s32.totalorder %s39_s20, 0 }
   0xf   : > { %p1927_p8 = por %p56_p5, %p55_p3  ;;  %p113_p10 = scmp.eq.s32.totalorder %s1629_s16, 1 }
  0x10   : > { %p1931_p9 = por %p107_p6, %p49_p1  ;;  %p1665_p13 = scmp.lt.s32.totalorder %s1858_s14, 2 }
  0x11   : > { %s1936_s23 = scalar_select %p40_p7, %s1846_s11, %s42_s18  }
  0x12   : > { %p1938_p11 = por %p113_p10, %p55_p3  ;;  %s1945_s25 = sand.u32 1, %s1846_s11  }
  0x13   : > { %s1632_s26 = sshll.u32 %s1945_s25, 11  ;;  %s1646_s27 = sshll.u32 %s1854_s13, 15 }
  0x14   : > { %s144_s30 = scalar_lea.hbm %s2564_s0, %s1646_s27  ;;  %s137_s3 = scalar_lea.vmem [#allocation2], %s1632_s26 }
  0x15   : > { %s145_s4 = sshll.u32 %s137_s3, 4  ;;  %p1958_p0 = pnand %p1665_p13, %p1921_p4  ;;  %s146_s4 = int_to_ptr.vmem [resolvable:$true] %s145_s4 }
  0x16   : > { %p1638_p1 = scmp.ge.s32.totalorder %s1858_s14, 1  ;;  %s134_s6 = scalar_lea.sflag [#allocation3], %s1945_s25 }
  0x17   : > { %p1720_p2 = pneg %p1958_p0  ;;  %s1731_s7 = scalar_lea.vmem %s146_s4, 32768 }
  0x18   : > { %p1732_p3 = scmp.ne.s32.totalorder %s146_s4, %s1731_s7  ;;  %s1860_s8 = smov [#allocation2]  }
  0x19   : > { %s1736_s15 = sshll.u32 %s1860_s8, 4  ;;  %s1737_s15 = int_to_ptr.vmem [resolvable:$false] %s1736_s15 }
  0x1a   : > { %p1734_p5 = pnand %p1732_p3, %p1720_p2  ;;  %s1738_s16 = scalar_lea.vmem %s1737_s15, 65536 }
  0x1b   : > { %p1739_p4 = scmp.lt.s32.totalorder %s146_s4, %s1737_s15  ;;  %p1740_p7 = scmp.lt.s32.totalorder %s1738_s16, %s1731_s7 }
  0x1c   : > { %p1735_p6 = pneg %p1734_p5 }
  0x1d   : > { %p1741_p10 = por %p1740_p7, %p1739_p4 }
  0x1f   : > { %p1742_p13 = pnand %p1741_p10, %p1735_p6 }
  0x21   : > { %1745 = shalt.err (!%p1742_p13)
}
  0x22   : > { %s1861_s18 = smov 128   ;;  %s1862_s19 = smov 8  }
  0x23   : > { %1657 = dma.hbm_to_vmem [thread:$0]  (!%p1958_p0), %s144_s30, 32768, %s146_s4, %s134_s6, %s1861_s18, %s1861_s18, %s1862_s19  }
  0x24   : > { %p175_p3 = scmp.lt.s32.totalorder %s1858_s14, 3  ;;  %s166_s29 = scalar_lea.hbm %s2565_s1, %s1646_s27 }
  0x25   : > { %s159_s7 = scalar_lea.vmem [#allocation5], %s1632_s26  ;;  %s156_s15 = scalar_lea.sflag [#allocation6], %s1945_s25 }
  0x26   : > { %p1979_p5 = pnand %p1638_p1, %p175_p3  ;;  %s167_s8 = sshll.u32 %s159_s7, 4  ;;  %s168_s8 = int_to_ptr.vmem [resolvable:$true] %s167_s8 }
  0x27   : > { %s1759_s16 = scalar_lea.vmem %s168_s8, 32768  ;;  %s1863_s30 = smov [#allocation5]  }
  0x28   : > { %p1760_p6 = scmp.ne.s32.totalorder %s168_s8, %s1759_s16  ;;  %s1764_s4 = sshll.u32 %s1863_s30, 4  ;;  %s1765_s4 = int_to_ptr.vmem [resolvable:$false] %s1764_s4 }
  0x29   : > { %s1766_s27 = scalar_lea.vmem %s1765_s4, 65536  ;;  %p1767_p10 = scmp.lt.s32.totalorder %s168_s8, %s1765_s4 }
  0x2a   : > { %p1762_p4 = pnand %p1760_p6, %p1720_p2  ;;  %p1768_p1 = scmp.lt.s32.totalorder %s1766_s27, %s1759_s16 }
  0x2c   : > { %p1763_p7 = pneg %p1762_p4  ;;  %p1769_p13 = por %p1768_p1, %p1767_p10 }
  0x2e   : > { %p1770_p3 = pnand %p1769_p13, %p1763_p7 }
  0x30   : > { %1773 = shalt.err (!%p1770_p3)
}
  0x31   : > { %1660 = dma.hbm_to_vmem [thread:$0]  (!%p1958_p0), %s166_s29, 32768, %s168_s8, %s156_s15, %s1861_s18, %s1861_s18, %s1862_s19  }
  0x32   : > { %179 = sbr.rel (%p1979_p5) target bundleno = 587 (0x24b), region = 28  ;;  %s1994_s25 = sand.u32 (!%p1979_p5), 1, %s1842_s10  }
  0x33   : > { %s1639_s26 = sshll.u32 (!%p1979_p5), %s1994_s25, 11  ;;  %s182_s6 = scalar_lea.sflag (!%p1979_p5), [#allocation3], %s1994_s25 }
  0x34   : > { %s1998_s20 = scalar_lea.vmem (!%p1979_p5), [#allocation2], %s1639_s26 }
  0x37   : > { %1825 = dma.done.wait (%p1927_p8), %s182_s6, 32768  }
  0x38   : > { %1827 = vsyncadd (%p1927_p8), %s182_s6, 4294934528  ;;  %s191_s5 = scalar_lea.sflag [#allocation6], %s1994_s25  ;;  %s2005_s18 = scalar_lea.vmem [#allocation5], %s1639_s26 }
  0x39   : > { %1829 = dma.done.wait (%p1927_p8), %s191_s5, 32768  }
  0x3a   : > { %1831 = vsyncadd (%p1927_p8), %s191_s5, 4294934528  ;;  %v229_v0 = vld [vmem:[%s1998_s20] sm:$0xff]  ;;  %v230_v1 = vld [vmem:[%s1998_s20 + $0x8] sm:$0xff]  ;;  %s1641_s21 = sshll.u32 %s1994_s25, 3  ;;  %s1643_s19 = sshll.u32 %s1850_s12, 7 }
  0x3b   : > { %v485_v2 = vld [vmem:[%s2005_s18] sm:$0xff]  ;;  %v486_v3 = vld [vmem:[%s2005_s18 + $0x8] sm:$0xff]  ;;  %v231_v4 = vld [vmem:[%s1998_s20 + $0x10] sm:$0xff]  ;;  %s219_s28 = scalar_lea.vmem [#allocation7], %s1641_s21  ;;  %s1523_s8 = scalar_lea.hbm %s2566_s2, %s1643_s19 }
  0x3c   : > { %v487_v5 = vld [vmem:[%s2005_s18 + $0x10] sm:$0xff]  ;;  %v741_v6 = vsub.f32 %v229_v0, %v485_v2  ;;  %v742_v7 = vsub.f32 %v230_v1, %v486_v3  ;;  %v232_v8 = vld [vmem:[%s1998_s20 + $0x18] sm:$0xff]  ;;  %v233_v11 = vld [vmem:[%s1998_s20 + $0x20] sm:$0xff]  ;;  %s1525_s29 = sshll.u32 %s219_s28, 4  ;;  %s1512_s15 = scalar_lea.sflag [#allocation4], %s1994_s25  ;;  %s1526_s29 = int_to_ptr.vmem [resolvable:$true] %s1525_s29 }
  0x3d   : > { %v488_v9 = vld [vmem:[%s2005_s18 + $0x18] sm:$0xff]  ;;  %v743_v10 = vsub.f32 %v231_v4, %v487_v5  ;;  %v489_v12 = vld [vmem:[%s2005_s18 + $0x20] sm:$0xff]  ;;  %v234_v16 = vld [vmem:[%s1998_s20 + $0x28] sm:$0xff]  ;;  %s1774_s16 = scalar_lea.vmem %s1526_s29, 128  ;;  %s1864_s30 = smov [#allocation7]  }
  0x3e   : > { %v744_v13 = vsub.f32 %v232_v8, %v488_v9  ;;  %v997_v14 = vand.u32 2147483647, %v741_v6  ;;  %v998_v15 = vand.u32 2147483647, %v742_v7  ;;  %v490_v17 = vld [vmem:[%s2005_s18 + $0x28] sm:$0xff]  ;;  %v745_v18 = vsub.f32 %v233_v11, %v489_v12  ;;  %v235_v20 = vld [vmem:[%s1998_s20 + $0x30] sm:$0xff]  ;;  %p1775_p8 = scmp.ne.s32.totalorder %s1526_s29, %s1774_s16 }
  0x3f   : > { %v999_v19 = vand.u32 2147483647, %v743_v10  ;;  %v491_v21 = vld [vmem:[%s2005_s18 + $0x30] sm:$0xff]  ;;  %v746_v22 = vsub.f32 %v234_v16, %v490_v17  ;;  %v236_v25 = vld [vmem:[%s1998_s20 + $0x38] sm:$0xff]  ;;  %v237_v30 = vld [vmem:[%s1998_s20 + $0x40] sm:$0xff]  ;;  %s1778_s4 = sshll.u32 %s1864_s30, 4  ;;  %s1779_s4 = int_to_ptr.vmem [resolvable:$false] %s1778_s4 }
  0x40   : > { %v1000_v23 = vand.u32 2147483647, %v744_v13  ;;  %v1253_v24 = vadd.f32 %v998_v15, %v997_v14  ;;  %v492_v26 = vld [vmem:[%s2005_s18 + $0x38] sm:$0xff]  ;;  %v747_v27 = vsub.f32 %v235_v20, %v491_v21  ;;  %v1001_v28 = vand.u32 2147483647, %v745_v18  ;;  %v493_v31 = vld [vmem:[%s2005_s18 + $0x40] sm:$0xff]  ;;  %p1776_p0 = pnand %p1775_p8, %p1931_p9  ;;  %p1781_p5 = scmp.lt.s32.totalorder %s1526_s29, %s1779_s4 }
  0x41   : > { %v748_v32 = vsub.f32 %v236_v25, %v492_v26  ;;  %v1002_v33 = vand.u32 2147483647, %v746_v22  ;;  %v238_v35 = vld [vmem:[%s1998_s20 + $0x48] sm:$0xff]  ;;  %v749_v37 = vsub.f32 %v237_v30, %v493_v31  ;;  %v239_v40 = vld [vmem:[%s1998_s20 + $0x50] sm:$0xff]  ;;  %v240_v45 = vld [vmem:[%s1998_s20 + $0x58] sm:$0xff]  ;;  %s1780_s27 = scalar_lea.vmem %s1779_s4, 256 }
  0x42   : > { %v1254_v29 = vadd.f32 %v1253_v24, %v999_v19  ;;  %v494_v36 = vld [vmem:[%s2005_s18 + $0x48] sm:$0xff]  ;;  %v1003_v38 = vand.u32 2147483647, %v747_v27  ;;  %v495_v41 = vld [vmem:[%s2005_s18 + $0x50] sm:$0xff]  ;;  %v496_v46 = vld [vmem:[%s2005_s18 + $0x58] sm:$0xff]  ;;  %p1777_p2 = pneg %p1776_p0  ;;  %p1782_p6 = scmp.lt.s32.totalorder %s1780_s27, %s1774_s16 }
  0x43   : > { %v750_v42 = vsub.f32 %v238_v35, %v494_v36  ;;  %v1004_v43 = vand.u32 2147483647, %v748_v32  ;;  %v751_v47 = vsub.f32 %v239_v40, %v495_v41  ;;  %v1005_v48 = vand.u32 2147483647, %v749_v37  ;;  %v241_v50 = vld [vmem:[%s1998_s20 + $0x60] sm:$0xff]  ;;  %v242_v55 = vld [vmem:[%s1998_s20 + $0x68] sm:$0xff] }
  0x44   : > { %v1255_v34 = vadd.f32 %v1254_v29, %v1000_v23  ;;  %v497_v51 = vld [vmem:[%s2005_s18 + $0x60] sm:$0xff]  ;;  %v752_v52 = vsub.f32 %v240_v45, %v496_v46  ;;  %v498_v56 = vld [vmem:[%s2005_s18 + $0x68] sm:$0xff]  ;;  %v243_v60 = vld [vmem:[%s1998_s20 + $0x70] sm:$0xff]  ;;  %p1783_p4 = por %p1782_p6, %p1781_p5 }
  0x45   : > { %v1006_v53 = vand.u32 2147483647, %v750_v42  ;;  %v753_v57 = vsub.f32 %v241_v50, %v497_v51  ;;  %v1007_v58 = vand.u32 2147483647, %v751_v47  ;;  %v499_v61 = vld [vmem:[%s2005_s18 + $0x70] sm:$0xff]  ;;  %v754_v62 = vsub.f32 %v242_v55, %v498_v56  ;;  %v244_v1 = vld [vmem:[%s1998_s20 + $0x78] sm:$0xff] }
  0x46   : > { %v1256_v39 = vadd.f32 %v1255_v34, %v1001_v28  ;;  %v1008_v63 = vand.u32 2147483647, %v752_v52  ;;  %v500_v2 = vld [vmem:[%s2005_s18 + $0x78] sm:$0xff]  ;;  %v755_v3 = vsub.f32 %v243_v60, %v499_v61  ;;  %v245_v6 = vld [vmem:[%s1998_s20 + $0x80] sm:$0xff]  ;;  %v246_v11 = vld [vmem:[%s1998_s20 + $0x88] sm:$0xff]  ;;  %p1784_p7 = pnand %p1783_p4, %p1777_p2 }
  0x47   : > { %v1009_v4 = vand.u32 2147483647, %v753_v57  ;;  %v501_v7 = vld [vmem:[%s2005_s18 + $0x80] sm:$0xff]  ;;  %v756_v8 = vsub.f32 %v244_v1, %v500_v2  ;;  %v1010_v9 = vand.u32 2147483647, %v754_v62  ;;  %v502_v12 = vld [vmem:[%s2005_s18 + $0x88] sm:$0xff] }
  0x48   : > { %v1257_v44 = vadd.f32 %v1256_v39, %v1002_v33  ;;  %v757_v13 = vsub.f32 %v245_v6, %v501_v7  ;;  %v1011_v14 = vand.u32 2147483647, %v755_v3  ;;  %v247_v16 = vld [vmem:[%s1998_s20 + $0x90] sm:$0xff]  ;;  %v758_v18 = vsub.f32 %v246_v11, %v502_v12  ;;  %v248_v21 = vld [vmem:[%s1998_s20 + $0x98] sm:$0xff]  ;;  %v249_v26 = vld [vmem:[%s1998_s20 + $0xa0] sm:$0xff] }
  0x49   : > { %v503_v17 = vld [vmem:[%s2005_s18 + $0x90] sm:$0xff]  ;;  %v1012_v19 = vand.u32 2147483647, %v756_v8  ;;  %v504_v22 = vld [vmem:[%s2005_s18 + $0x98] sm:$0xff]  ;;  %v505_v27 = vld [vmem:[%s2005_s18 + $0xa0] sm:$0xff] }
  0x4a   : > { %v1258_v49 = vadd.f32 %v1257_v44, %v1003_v38  ;;  %v759_v23 = vsub.f32 %v247_v16, %v503_v17  ;;  %v1013_v24 = vand.u32 2147483647, %v757_v13  ;;  %v760_v28 = vsub.f32 %v248_v21, %v504_v22  ;;  %v250_v31 = vld [vmem:[%s1998_s20 + $0xa8] sm:$0xff]  ;;  %v251_v36 = vld [vmem:[%s1998_s20 + $0xb0] sm:$0xff]  ;;  %v252_v41 = vld [vmem:[%s1998_s20 + $0xb8] sm:$0xff] }
  0x4b   : > { %v1014_v29 = vand.u32 2147483647, %v758_v18  ;;  %v506_v32 = vld [vmem:[%s2005_s18 + $0xa8] sm:$0xff]  ;;  %v761_v33 = vsub.f32 %v249_v26, %v505_v27  ;;  %v507_v37 = vld [vmem:[%s2005_s18 + $0xb0] sm:$0xff]  ;;  %v508_v42 = vld [vmem:[%s2005_s18 + $0xb8] sm:$0xff] }
  0x4c   : > { %v1259_v54 = vadd.f32 %v1258_v49, %v1004_v43  ;;  %v1015_v34 = vand.u32 2147483647, %v759_v23  ;;  %v762_v38 = vsub.f32 %v250_v31, %v506_v32  ;;  %v1016_v39 = vand.u32 2147483647, %v760_v28  ;;  %v253_v46 = vld [vmem:[%s1998_s20 + $0xc0] sm:$0xff]  ;;  %v254_v51 = vld [vmem:[%s1998_s20 + $0xc8] sm:$0xff] }
  0x4d   : > { %v763_v43 = vsub.f32 %v251_v36, %v507_v37  ;;  %v1017_v44 = vand.u32 2147483647, %v761_v33  ;;  %v509_v47 = vld [vmem:[%s2005_s18 + $0xc0] sm:$0xff]  ;;  %v510_v52 = vld [vmem:[%s2005_s18 + $0xc8] sm:$0xff]  ;;  %v255_v56 = vld [vmem:[%s1998_s20 + $0xd0] sm:$0xff] }
  0x4e   : > { %v1260_v59 = vadd.f32 %v1259_v54, %v1005_v48  ;;  %v764_v48 = vsub.f32 %v252_v41, %v508_v42  ;;  %v1018_v49 = vand.u32 2147483647, %v762_v38  ;;  %v511_v57 = vld [vmem:[%s2005_s18 + $0xd0] sm:$0xff]  ;;  %v256_v61 = vld [vmem:[%s1998_s20 + $0xd8] sm:$0xff]  ;;  %v257_v2 = vld [vmem:[%s1998_s20 + $0xe0] sm:$0xff] }
  0x4f   : > { %v1019_v54 = vand.u32 2147483647, %v763_v43  ;;  %v512_v62 = vld [vmem:[%s2005_s18 + $0xd8] sm:$0xff]  ;;  %v513_v3 = vld [vmem:[%s2005_s18 + $0xe0] sm:$0xff]  ;;  %v258_v7 = vld [vmem:[%s1998_s20 + $0xe8] sm:$0xff] }
  0x50   : > { %v1261_v0 = vadd.f32 %v1260_v59, %v1006_v53  ;;  %v765_v53 = vsub.f32 %v253_v46, %v509_v47  ;;  %v1020_v59 = vand.u32 2147483647, %v764_v48  ;;  %v514_v8 = vld [vmem:[%s2005_s18 + $0xe8] sm:$0xff]  ;;  %v259_v12 = vld [vmem:[%s1998_s20 + $0xf0] sm:$0xff]  ;;  %v260_v17 = vld [vmem:[%s1998_s20 + $0xf8] sm:$0xff] }
  0x51   : > { %v515_v13 = vld [vmem:[%s2005_s18 + $0xf0] sm:$0xff]  ;;  %v516_v18 = vld [vmem:[%s2005_s18 + $0xf8] sm:$0xff]  ;;  %v261_v22 = vld [vmem:[%s1998_s20 + $0x100] sm:$0xff] }
  0x52   : > { %v1262_v5 = vadd.f32 %v1261_v0, %v1007_v58  ;;  %v766_v58 = vsub.f32 %v254_v51, %v510_v52  ;;  %v1021_v0 = vand.u32 2147483647, %v765_v53  ;;  %v517_v23 = vld [vmem:[%s2005_s18 + $0x100] sm:$0xff]  ;;  %v262_v27 = vld [vmem:[%s1998_s20 + $0x108] sm:$0xff]  ;;  %v263_v32 = vld [vmem:[%s1998_s20 + $0x110] sm:$0xff] }
  0x53   : > { %v518_v28 = vld [vmem:[%s2005_s18 + $0x108] sm:$0xff]  ;;  %v519_v33 = vld [vmem:[%s2005_s18 + $0x110] sm:$0xff]  ;;  %v264_v37 = vld [vmem:[%s1998_s20 + $0x118] sm:$0xff] }
  0x54   : > { %v1263_v10 = vadd.f32 %v1262_v5, %v1008_v63  ;;  %v767_v63 = vsub.f32 %v255_v56, %v511_v57  ;;  %v1022_v5 = vand.u32 2147483647, %v766_v58  ;;  %v520_v38 = vld [vmem:[%s2005_s18 + $0x118] sm:$0xff]  ;;  %v265_v42 = vld [vmem:[%s1998_s20 + $0x120] sm:$0xff]  ;;  %v266_v47 = vld [vmem:[%s1998_s20 + $0x128] sm:$0xff] }
  0x55   : > { %v521_v43 = vld [vmem:[%s2005_s18 + $0x120] sm:$0xff]  ;;  %v522_v48 = vld [vmem:[%s2005_s18 + $0x128] sm:$0xff]  ;;  %v267_v52 = vld [vmem:[%s1998_s20 + $0x130] sm:$0xff] }
  0x56   : > { %v1264_v15 = vadd.f32 %v1263_v10, %v1009_v4  ;;  %v768_v4 = vsub.f32 %v256_v61, %v512_v62  ;;  %v1023_v10 = vand.u32 2147483647, %v767_v63  ;;  %v523_v53 = vld [vmem:[%s2005_s18 + $0x130] sm:$0xff]  ;;  %v268_v57 = vld [vmem:[%s1998_s20 + $0x138] sm:$0xff]  ;;  %v269_v62 = vld [vmem:[%s1998_s20 + $0x140] sm:$0xff] }
  0x57   : > { %v524_v58 = vld [vmem:[%s2005_s18 + $0x138] sm:$0xff]  ;;  %v525_v63 = vld [vmem:[%s2005_s18 + $0x140] sm:$0xff] }
  0x58   : > { %v1265_v20 = vadd.f32 %v1264_v15, %v1010_v9  ;;  %v769_v9 = vsub.f32 %v257_v2, %v513_v3  ;;  %v1024_v15 = vand.u32 2147483647, %v768_v4  ;;  %v270_v3 = vld [vmem:[%s1998_s20 + $0x148] sm:$0xff] }
  0x59   : > { %v526_v4 = vld [vmem:[%s2005_s18 + $0x148] sm:$0xff] }
  0x5a   : > { %v1266_v25 = vadd.f32 %v1265_v20, %v1011_v14  ;;  %v770_v14 = vsub.f32 %v258_v7, %v514_v8  ;;  %v1025_v20 = vand.u32 2147483647, %v769_v9  ;;  %v271_v8 = vld [vmem:[%s1998_s20 + $0x150] sm:$0xff] }
  0x5b   : > { %v527_v9 = vld [vmem:[%s2005_s18 + $0x150] sm:$0xff] }
  0x5c   : > { %v1267_v30 = vadd.f32 %v1266_v25, %v1012_v19  ;;  %v771_v19 = vsub.f32 %v259_v12, %v515_v13  ;;  %v1026_v25 = vand.u32 2147483647, %v770_v14  ;;  %v272_v13 = vld [vmem:[%s1998_s20 + $0x158] sm:$0xff] }
  0x5d   : > { %v528_v14 = vld [vmem:[%s2005_s18 + $0x158] sm:$0xff] }
  0x5e   : > { %v1268_v35 = vadd.f32 %v1267_v30, %v1013_v24  ;;  %v772_v24 = vsub.f32 %v260_v17, %v516_v18  ;;  %v1027_v30 = vand.u32 2147483647, %v771_v19  ;;  %v273_v18 = vld [vmem:[%s1998_s20 + $0x160] sm:$0xff] }
  0x5f   : > { %v529_v19 = vld [vmem:[%s2005_s18 + $0x160] sm:$0xff] }
  0x60   : > { %v1269_v40 = vadd.f32 %v1268_v35, %v1014_v29  ;;  %v773_v29 = vsub.f32 %v261_v22, %v517_v23  ;;  %v1028_v35 = vand.u32 2147483647, %v772_v24  ;;  %v274_v23 = vld [vmem:[%s1998_s20 + $0x168] sm:$0xff] }
  0x61   : > { %v530_v24 = vld [vmem:[%s2005_s18 + $0x168] sm:$0xff] }
  0x62   : > { %v1270_v45 = vadd.f32 %v1269_v40, %v1015_v34  ;;  %v774_v34 = vsub.f32 %v262_v27, %v518_v28  ;;  %v1029_v40 = vand.u32 2147483647, %v773_v29  ;;  %v275_v28 = vld [vmem:[%s1998_s20 + $0x170] sm:$0xff] }
  0x63   : > { %v531_v29 = vld [vmem:[%s2005_s18 + $0x170] sm:$0xff] }
  0x64   : > { %v1271_v50 = vadd.f32 %v1270_v45, %v1016_v39  ;;  %v775_v39 = vsub.f32 %v263_v32, %v519_v33  ;;  %v1030_v45 = vand.u32 2147483647, %v774_v34  ;;  %v276_v33 = vld [vmem:[%s1998_s20 + $0x178] sm:$0xff] }
  0x65   : > { %v532_v34 = vld [vmem:[%s2005_s18 + $0x178] sm:$0xff] }
  0x66   : > { %v1272_v55 = vadd.f32 %v1271_v50, %v1017_v44  ;;  %v776_v44 = vsub.f32 %v264_v37, %v520_v38  ;;  %v1031_v50 = vand.u32 2147483647, %v775_v39  ;;  %v277_v38 = vld [vmem:[%s1998_s20 + $0x180] sm:$0xff] }
  0x67   : > { %v533_v39 = vld [vmem:[%s2005_s18 + $0x180] sm:$0xff] }
  0x68   : > { %v1273_v60 = vadd.f32 %v1272_v55, %v1018_v49  ;;  %v777_v49 = vsub.f32 %v265_v42, %v521_v43  ;;  %v1032_v55 = vand.u32 2147483647, %v776_v44  ;;  %v278_v43 = vld [vmem:[%s1998_s20 + $0x188] sm:$0xff] }
  0x69   : > { %v534_v44 = vld [vmem:[%s2005_s18 + $0x188] sm:$0xff] }
  0x6a   : > { %v1274_v1 = vadd.f32 %v1273_v60, %v1019_v54  ;;  %v778_v54 = vsub.f32 %v266_v47, %v522_v48  ;;  %v1033_v60 = vand.u32 2147483647, %v777_v49  ;;  %v279_v48 = vld [vmem:[%s1998_s20 + $0x190] sm:$0xff] }
  0x6b   : > { %v535_v49 = vld [vmem:[%s2005_s18 + $0x190] sm:$0xff] }
  0x6c   : > { %v1275_v6 = vadd.f32 %v1274_v1, %v1020_v59  ;;  %v779_v59 = vsub.f32 %v267_v52, %v523_v53  ;;  %v1034_v1 = vand.u32 2147483647, %v778_v54  ;;  %v280_v53 = vld [vmem:[%s1998_s20 + $0x198] sm:$0xff] }
  0x6d   : > { %v536_v54 = vld [vmem:[%s2005_s18 + $0x198] sm:$0xff] }
  0x6e   : > { %v1276_v11 = vadd.f32 %v1275_v6, %v1021_v0  ;;  %v780_v0 = vsub.f32 %v268_v57, %v524_v58  ;;  %v1035_v6 = vand.u32 2147483647, %v779_v59  ;;  %v281_v58 = vld [vmem:[%s1998_s20 + $0x1a0] sm:$0xff] }
  0x6f   : > { %v537_v59 = vld [vmem:[%s2005_s18 + $0x1a0] sm:$0xff] }
  0x70   : > { %v1277_v16 = vadd.f32 %v1276_v11, %v1022_v5  ;;  %v781_v5 = vsub.f32 %v269_v62, %v525_v63  ;;  %v1036_v11 = vand.u32 2147483647, %v780_v0  ;;  %v282_v63 = vld [vmem:[%s1998_s20 + $0x1a8] sm:$0xff] }
  0x71   : > { %v538_v0 = vld [vmem:[%s2005_s18 + $0x1a8] sm:$0xff] }
  0x72   : > { %v1278_v21 = vadd.f32 %v1277_v16, %v1023_v10  ;;  %v782_v10 = vsub.f32 %v270_v3, %v526_v4  ;;  %v1037_v16 = vand.u32 2147483647, %v781_v5  ;;  %v283_v4 = vld [vmem:[%s1998_s20 + $0x1b0] sm:$0xff] }
  0x73   : > { %v539_v5 = vld [vmem:[%s2005_s18 + $0x1b0] sm:$0xff] }
  0x74   : > { %v1279_v26 = vadd.f32 %v1278_v21, %v1024_v15  ;;  %v783_v15 = vsub.f32 %v271_v8, %v527_v9  ;;  %v1038_v21 = vand.u32 2147483647, %v782_v10  ;;  %v284_v9 = vld [vmem:[%s1998_s20 + $0x1b8] sm:$0xff] }
  0x75   : > { %v540_v10 = vld [vmem:[%s2005_s18 + $0x1b8] sm:$0xff] }
  0x76   : > { %v1280_v31 = vadd.f32 %v1279_v26, %v1025_v20  ;;  %v784_v20 = vsub.f32 %v272_v13, %v528_v14  ;;  %v1039_v26 = vand.u32 2147483647, %v783_v15  ;;  %v285_v14 = vld [vmem:[%s1998_s20 + $0x1c0] sm:$0xff] }
  0x77   : > { %v541_v15 = vld [vmem:[%s2005_s18 + $0x1c0] sm:$0xff] }
  0x78   : > { %v1281_v36 = vadd.f32 %v1280_v31, %v1026_v25  ;;  %v785_v25 = vsub.f32 %v273_v18, %v529_v19  ;;  %v1040_v31 = vand.u32 2147483647, %v784_v20  ;;  %v286_v19 = vld [vmem:[%s1998_s20 + $0x1c8] sm:$0xff] }
  0x79   : > { %v542_v20 = vld [vmem:[%s2005_s18 + $0x1c8] sm:$0xff] }
  0x7a   : > { %v1282_v41 = vadd.f32 %v1281_v36, %v1027_v30  ;;  %v786_v30 = vsub.f32 %v274_v23, %v530_v24  ;;  %v1041_v36 = vand.u32 2147483647, %v785_v25  ;;  %v287_v24 = vld [vmem:[%s1998_s20 + $0x1d0] sm:$0xff] }
  0x7b   : > { %v543_v25 = vld [vmem:[%s2005_s18 + $0x1d0] sm:$0xff] }
  0x7c   : > { %v1283_v46 = vadd.f32 %v1282_v41, %v1028_v35  ;;  %v787_v35 = vsub.f32 %v275_v28, %v531_v29  ;;  %v1042_v41 = vand.u32 2147483647, %v786_v30  ;;  %v288_v29 = vld [vmem:[%s1998_s20 + $0x1d8] sm:$0xff] }
  0x7d   : > { %v544_v30 = vld [vmem:[%s2005_s18 + $0x1d8] sm:$0xff] }
  0x7e   : > { %v1284_v51 = vadd.f32 %v1283_v46, %v1029_v40  ;;  %v788_v40 = vsub.f32 %v276_v33, %v532_v34  ;;  %v1043_v46 = vand.u32 2147483647, %v787_v35  ;;  %v289_v34 = vld [vmem:[%s1998_s20 + $0x1e0] sm:$0xff] }
  0x7f   : > { %v545_v35 = vld [vmem:[%s2005_s18 + $0x1e0] sm:$0xff] }
  0x80   : > { %v1285_v56 = vadd.f32 %v1284_v51, %v1030_v45  ;;  %v789_v45 = vsub.f32 %v277_v38, %v533_v39  ;;  %v1044_v51 = vand.u32 2147483647, %v788_v40  ;;  %v290_v39 = vld [vmem:[%s1998_s20 + $0x1e8] sm:$0xff] }
  0x81   : > { %v546_v40 = vld [vmem:[%s2005_s18 + $0x1e8] sm:$0xff] }
  0x82   : > { %v1286_v61 = vadd.f32 %v1285_v56, %v1031_v50  ;;  %v790_v50 = vsub.f32 %v278_v43, %v534_v44  ;;  %v1045_v56 = vand.u32 2147483647, %v789_v45  ;;  %v291_v44 = vld [vmem:[%s1998_s20 + $0x1f0] sm:$0xff] }
  0x83   : > { %v547_v45 = vld [vmem:[%s2005_s18 + $0x1f0] sm:$0xff] }
  0x84   : > { %v1287_v2 = vadd.f32 %v1286_v61, %v1032_v55  ;;  %v791_v55 = vsub.f32 %v279_v48, %v535_v49  ;;  %v1046_v61 = vand.u32 2147483647, %v790_v50  ;;  %v292_v49 = vld [vmem:[%s1998_s20 + $0x1f8] sm:$0xff] }
  0x85   : > { %v548_v50 = vld [vmem:[%s2005_s18 + $0x1f8] sm:$0xff] }
  0x86   : > { %v1288_v7 = vadd.f32 %v1287_v2, %v1033_v60  ;;  %v792_v60 = vsub.f32 %v280_v53, %v536_v54  ;;  %v1047_v2 = vand.u32 2147483647, %v791_v55  ;;  %v293_v54 = vld [vmem:[%s1998_s20 + $0x200] sm:$0xff] }
  0x87   : > { %v549_v55 = vld [vmem:[%s2005_s18 + $0x200] sm:$0xff] }
  0x88   : > { %v1289_v12 = vadd.f32 %v1288_v7, %v1034_v1  ;;  %v793_v1 = vsub.f32 %v281_v58, %v537_v59  ;;  %v1048_v7 = vand.u32 2147483647, %v792_v60  ;;  %v294_v59 = vld [vmem:[%s1998_s20 + $0x208] sm:$0xff] }
  0x89   : > { %v550_v60 = vld [vmem:[%s2005_s18 + $0x208] sm:$0xff] }
  0x8a   : > { %v1290_v17 = vadd.f32 %v1289_v12, %v1035_v6  ;;  %v794_v6 = vsub.f32 %v282_v63, %v538_v0  ;;  %v1049_v12 = vand.u32 2147483647, %v793_v1  ;;  %v295_v0 = vld [vmem:[%s1998_s20 + $0x210] sm:$0xff] }
  0x8b   : > { %v551_v1 = vld [vmem:[%s2005_s18 + $0x210] sm:$0xff] }
  0x8c   : > { %v1291_v22 = vadd.f32 %v1290_v17, %v1036_v11  ;;  %v795_v11 = vsub.f32 %v283_v4, %v539_v5  ;;  %v1050_v17 = vand.u32 2147483647, %v794_v6  ;;  %v296_v5 = vld [vmem:[%s1998_s20 + $0x218] sm:$0xff] }
  0x8d   : > { %v552_v6 = vld [vmem:[%s2005_s18 + $0x218] sm:$0xff] }
  0x8e   : > { %v1292_v27 = vadd.f32 %v1291_v22, %v1037_v16  ;;  %v796_v16 = vsub.f32 %v284_v9, %v540_v10  ;;  %v1051_v22 = vand.u32 2147483647, %v795_v11  ;;  %v297_v10 = vld [vmem:[%s1998_s20 + $0x220] sm:$0xff] }
  0x8f   : > { %v553_v11 = vld [vmem:[%s2005_s18 + $0x220] sm:$0xff] }
  0x90   : > { %v1293_v32 = vadd.f32 %v1292_v27, %v1038_v21  ;;  %v797_v21 = vsub.f32 %v285_v14, %v541_v15  ;;  %v1052_v27 = vand.u32 2147483647, %v796_v16  ;;  %v298_v15 = vld [vmem:[%s1998_s20 + $0x228] sm:$0xff] }
  0x91   : > { %v554_v16 = vld [vmem:[%s2005_s18 + $0x228] sm:$0xff] }
  0x92   : > { %v1294_v37 = vadd.f32 %v1293_v32, %v1039_v26  ;;  %v798_v26 = vsub.f32 %v286_v19, %v542_v20  ;;  %v1053_v32 = vand.u32 2147483647, %v797_v21  ;;  %v299_v20 = vld [vmem:[%s1998_s20 + $0x230] sm:$0xff] }
  0x93   : > { %v555_v21 = vld [vmem:[%s2005_s18 + $0x230] sm:$0xff] }
  0x94   : > { %v1295_v42 = vadd.f32 %v1294_v37, %v1040_v31  ;;  %v799_v31 = vsub.f32 %v287_v24, %v543_v25  ;;  %v1054_v37 = vand.u32 2147483647, %v798_v26  ;;  %v300_v25 = vld [vmem:[%s1998_s20 + $0x238] sm:$0xff] }
  0x95   : > { %v556_v26 = vld [vmem:[%s2005_s18 + $0x238] sm:$0xff] }
  0x96   : > { %v1296_v47 = vadd.f32 %v1295_v42, %v1041_v36  ;;  %v800_v36 = vsub.f32 %v288_v29, %v544_v30  ;;  %v1055_v42 = vand.u32 2147483647, %v799_v31  ;;  %v301_v30 = vld [vmem:[%s1998_s20 + $0x240] sm:$0xff] }
  0x97   : > { %v557_v31 = vld [vmem:[%s2005_s18 + $0x240] sm:$0xff] }
  0x98   : > { %v1297_v52 = vadd.f32 %v1296_v47, %v1042_v41  ;;  %v801_v41 = vsub.f32 %v289_v34, %v545_v35  ;;  %v1056_v47 = vand.u32 2147483647, %v800_v36  ;;  %v302_v35 = vld [vmem:[%s1998_s20 + $0x248] sm:$0xff] }
  0x99   : > { %v558_v36 = vld [vmem:[%s2005_s18 + $0x248] sm:$0xff] }
  0x9a   : > { %v1298_v57 = vadd.f32 %v1297_v52, %v1043_v46  ;;  %v802_v46 = vsub.f32 %v290_v39, %v546_v40  ;;  %v1057_v52 = vand.u32 2147483647, %v801_v41  ;;  %v303_v40 = vld [vmem:[%s1998_s20 + $0x250] sm:$0xff] }
  0x9b   : > { %v559_v41 = vld [vmem:[%s2005_s18 + $0x250] sm:$0xff] }
  0x9c   : > { %v1299_v62 = vadd.f32 %v1298_v57, %v1044_v51  ;;  %v803_v51 = vsub.f32 %v291_v44, %v547_v45  ;;  %v1058_v57 = vand.u32 2147483647, %v802_v46  ;;  %v304_v45 = vld [vmem:[%s1998_s20 + $0x258] sm:$0xff] }
  0x9d   : > { %v560_v46 = vld [vmem:[%s2005_s18 + $0x258] sm:$0xff] }
  0x9e   : > { %v1300_v3 = vadd.f32 %v1299_v62, %v1045_v56  ;;  %v804_v56 = vsub.f32 %v292_v49, %v548_v50  ;;  %v1059_v62 = vand.u32 2147483647, %v803_v51  ;;  %v305_v50 = vld [vmem:[%s1998_s20 + $0x260] sm:$0xff] }
  0x9f   : > { %v561_v51 = vld [vmem:[%s2005_s18 + $0x260] sm:$0xff] }
  0xa0   : > { %v1301_v8 = vadd.f32 %v1300_v3, %v1046_v61  ;;  %v805_v61 = vsub.f32 %v293_v54, %v549_v55  ;;  %v1060_v3 = vand.u32 2147483647, %v804_v56  ;;  %v306_v55 = vld [vmem:[%s1998_s20 + $0x268] sm:$0xff] }
  0xa1   : > { %v562_v56 = vld [vmem:[%s2005_s18 + $0x268] sm:$0xff] }
  0xa2   : > { %v1302_v13 = vadd.f32 %v1301_v8, %v1047_v2  ;;  %v806_v2 = vsub.f32 %v294_v59, %v550_v60  ;;  %v1061_v8 = vand.u32 2147483647, %v805_v61  ;;  %v307_v60 = vld [vmem:[%s1998_s20 + $0x270] sm:$0xff] }
  0xa3   : > { %v563_v61 = vld [vmem:[%s2005_s18 + $0x270] sm:$0xff] }
  0xa4   : > { %v1303_v18 = vadd.f32 %v1302_v13, %v1048_v7  ;;  %v807_v7 = vsub.f32 %v295_v0, %v551_v1  ;;  %v1062_v13 = vand.u32 2147483647, %v806_v2  ;;  %v308_v1 = vld [vmem:[%s1998_s20 + $0x278] sm:$0xff] }
  0xa5   : > { %v564_v2 = vld [vmem:[%s2005_s18 + $0x278] sm:$0xff] }
  0xa6   : > { %v1304_v23 = vadd.f32 %v1303_v18, %v1049_v12  ;;  %v808_v12 = vsub.f32 %v296_v5, %v552_v6  ;;  %v1063_v18 = vand.u32 2147483647, %v807_v7  ;;  %v309_v6 = vld [vmem:[%s1998_s20 + $0x280] sm:$0xff] }
  0xa7   : > { %v565_v7 = vld [vmem:[%s2005_s18 + $0x280] sm:$0xff] }
  0xa8   : > { %v1305_v28 = vadd.f32 %v1304_v23, %v1050_v17  ;;  %v809_v17 = vsub.f32 %v297_v10, %v553_v11  ;;  %v1064_v23 = vand.u32 2147483647, %v808_v12  ;;  %v310_v11 = vld [vmem:[%s1998_s20 + $0x288] sm:$0xff] }
  0xa9   : > { %v566_v12 = vld [vmem:[%s2005_s18 + $0x288] sm:$0xff] }
  0xaa   : > { %v1306_v33 = vadd.f32 %v1305_v28, %v1051_v22  ;;  %v810_v22 = vsub.f32 %v298_v15, %v554_v16  ;;  %v1065_v28 = vand.u32 2147483647, %v809_v17  ;;  %v311_v16 = vld [vmem:[%s1998_s20 + $0x290] sm:$0xff] }
  0xab   : > { %v567_v17 = vld [vmem:[%s2005_s18 + $0x290] sm:$0xff] }
  0xac   : > { %v1307_v38 = vadd.f32 %v1306_v33, %v1052_v27  ;;  %v811_v27 = vsub.f32 %v299_v20, %v555_v21  ;;  %v1066_v33 = vand.u32 2147483647, %v810_v22  ;;  %v312_v21 = vld [vmem:[%s1998_s20 + $0x298] sm:$0xff] }
  0xad   : > { %v568_v22 = vld [vmem:[%s2005_s18 + $0x298] sm:$0xff] }
  0xae   : > { %v1308_v43 = vadd.f32 %v1307_v38, %v1053_v32  ;;  %v812_v32 = vsub.f32 %v300_v25, %v556_v26  ;;  %v1067_v38 = vand.u32 2147483647, %v811_v27  ;;  %v313_v26 = vld [vmem:[%s1998_s20 + $0x2a0] sm:$0xff] }
  0xaf   : > { %v569_v27 = vld [vmem:[%s2005_s18 + $0x2a0] sm:$0xff] }
  0xb0   : > { %v1309_v48 = vadd.f32 %v1308_v43, %v1054_v37  ;;  %v813_v37 = vsub.f32 %v301_v30, %v557_v31  ;;  %v1068_v43 = vand.u32 2147483647, %v812_v32  ;;  %v314_v31 = vld [vmem:[%s1998_s20 + $0x2a8] sm:$0xff] }
  0xb1   : > { %v570_v32 = vld [vmem:[%s2005_s18 + $0x2a8] sm:$0xff] }
  0xb2   : > { %v1310_v53 = vadd.f32 %v1309_v48, %v1055_v42  ;;  %v814_v42 = vsub.f32 %v302_v35, %v558_v36  ;;  %v1069_v48 = vand.u32 2147483647, %v813_v37  ;;  %v315_v36 = vld [vmem:[%s1998_s20 + $0x2b0] sm:$0xff] }
  0xb3   : > { %v571_v37 = vld [vmem:[%s2005_s18 + $0x2b0] sm:$0xff] }
  0xb4   : > { %v1311_v58 = vadd.f32 %v1310_v53, %v1056_v47  ;;  %v815_v47 = vsub.f32 %v303_v40, %v559_v41  ;;  %v1070_v53 = vand.u32 2147483647, %v814_v42  ;;  %v316_v41 = vld [vmem:[%s1998_s20 + $0x2b8] sm:$0xff] }
  0xb5   : > { %v572_v42 = vld [vmem:[%s2005_s18 + $0x2b8] sm:$0xff] }
  0xb6   : > { %v1312_v63 = vadd.f32 %v1311_v58, %v1057_v52  ;;  %v816_v52 = vsub.f32 %v304_v45, %v560_v46  ;;  %v1071_v58 = vand.u32 2147483647, %v815_v47  ;;  %v317_v46 = vld [vmem:[%s1998_s20 + $0x2c0] sm:$0xff] }
  0xb7   : > { %v573_v47 = vld [vmem:[%s2005_s18 + $0x2c0] sm:$0xff] }
  0xb8   : > { %v1313_v4 = vadd.f32 %v1312_v63, %v1058_v57  ;;  %v817_v57 = vsub.f32 %v305_v50, %v561_v51  ;;  %v1072_v63 = vand.u32 2147483647, %v816_v52  ;;  %v318_v51 = vld [vmem:[%s1998_s20 + $0x2c8] sm:$0xff] }
  0xb9   : > { %v574_v52 = vld [vmem:[%s2005_s18 + $0x2c8] sm:$0xff] }
  0xba   : > { %v1314_v9 = vadd.f32 %v1313_v4, %v1059_v62  ;;  %v818_v62 = vsub.f32 %v306_v55, %v562_v56  ;;  %v1073_v4 = vand.u32 2147483647, %v817_v57  ;;  %v319_v56 = vld [vmem:[%s1998_s20 + $0x2d0] sm:$0xff] }
  0xbb   : > { %v575_v57 = vld [vmem:[%s2005_s18 + $0x2d0] sm:$0xff] }
  0xbc   : > { %v1315_v14 = vadd.f32 %v1314_v9, %v1060_v3  ;;  %v819_v3 = vsub.f32 %v307_v60, %v563_v61  ;;  %v1074_v9 = vand.u32 2147483647, %v818_v62  ;;  %v320_v61 = vld [vmem:[%s1998_s20 + $0x2d8] sm:$0xff] }
  0xbd   : > { %v576_v62 = vld [vmem:[%s2005_s18 + $0x2d8] sm:$0xff] }
  0xbe   : > { %v1316_v19 = vadd.f32 %v1315_v14, %v1061_v8  ;;  %v820_v8 = vsub.f32 %v308_v1, %v564_v2  ;;  %v1075_v14 = vand.u32 2147483647, %v819_v3  ;;  %v321_v2 = vld [vmem:[%s1998_s20 + $0x2e0] sm:$0xff] }
  0xbf   : > { %v577_v3 = vld [vmem:[%s2005_s18 + $0x2e0] sm:$0xff] }
  0xc0   : > { %v1317_v24 = vadd.f32 %v1316_v19, %v1062_v13  ;;  %v821_v13 = vsub.f32 %v309_v6, %v565_v7  ;;  %v1076_v19 = vand.u32 2147483647, %v820_v8  ;;  %v322_v7 = vld [vmem:[%s1998_s20 + $0x2e8] sm:$0xff] }
  0xc1   : > { %v578_v8 = vld [vmem:[%s2005_s18 + $0x2e8] sm:$0xff] }
  0xc2   : > { %v1318_v29 = vadd.f32 %v1317_v24, %v1063_v18  ;;  %v822_v18 = vsub.f32 %v310_v11, %v566_v12  ;;  %v1077_v24 = vand.u32 2147483647, %v821_v13  ;;  %v323_v12 = vld [vmem:[%s1998_s20 + $0x2f0] sm:$0xff] }
  0xc3   : > { %v579_v13 = vld [vmem:[%s2005_s18 + $0x2f0] sm:$0xff] }
  0xc4   : > { %v1319_v34 = vadd.f32 %v1318_v29, %v1064_v23  ;;  %v823_v23 = vsub.f32 %v311_v16, %v567_v17  ;;  %v1078_v29 = vand.u32 2147483647, %v822_v18  ;;  %v324_v17 = vld [vmem:[%s1998_s20 + $0x2f8] sm:$0xff] }
  0xc5   : > { %v580_v18 = vld [vmem:[%s2005_s18 + $0x2f8] sm:$0xff] }
  0xc6   : > { %v1320_v39 = vadd.f32 %v1319_v34, %v1065_v28  ;;  %v824_v28 = vsub.f32 %v312_v21, %v568_v22  ;;  %v1079_v34 = vand.u32 2147483647, %v823_v23  ;;  %v325_v22 = vld [vmem:[%s1998_s20 + $0x300] sm:$0xff] }
  0xc7   : > { %v581_v23 = vld [vmem:[%s2005_s18 + $0x300] sm:$0xff] }
  0xc8   : > { %v1321_v44 = vadd.f32 %v1320_v39, %v1066_v33  ;;  %v825_v33 = vsub.f32 %v313_v26, %v569_v27  ;;  %v1080_v39 = vand.u32 2147483647, %v824_v28  ;;  %v326_v27 = vld [vmem:[%s1998_s20 + $0x308] sm:$0xff] }
  0xc9   : > { %v582_v28 = vld [vmem:[%s2005_s18 + $0x308] sm:$0xff] }
  0xca   : > { %v1322_v49 = vadd.f32 %v1321_v44, %v1067_v38  ;;  %v826_v38 = vsub.f32 %v314_v31, %v570_v32  ;;  %v1081_v44 = vand.u32 2147483647, %v825_v33  ;;  %v327_v32 = vld [vmem:[%s1998_s20 + $0x310] sm:$0xff] }
  0xcb   : > { %v583_v33 = vld [vmem:[%s2005_s18 + $0x310] sm:$0xff] }
  0xcc   : > { %v1323_v54 = vadd.f32 %v1322_v49, %v1068_v43  ;;  %v827_v43 = vsub.f32 %v315_v36, %v571_v37  ;;  %v1082_v49 = vand.u32 2147483647, %v826_v38  ;;  %v328_v37 = vld [vmem:[%s1998_s20 + $0x318] sm:$0xff] }
  0xcd   : > { %v584_v38 = vld [vmem:[%s2005_s18 + $0x318] sm:$0xff] }
  0xce   : > { %v1324_v59 = vadd.f32 %v1323_v54, %v1069_v48  ;;  %v828_v48 = vsub.f32 %v316_v41, %v572_v42  ;;  %v1083_v54 = vand.u32 2147483647, %v827_v43  ;;  %v329_v42 = vld [vmem:[%s1998_s20 + $0x320] sm:$0xff] }
  0xcf   : > { %v585_v43 = vld [vmem:[%s2005_s18 + $0x320] sm:$0xff] }
  0xd0   : > { %v1325_v0 = vadd.f32 %v1324_v59, %v1070_v53  ;;  %v829_v53 = vsub.f32 %v317_v46, %v573_v47  ;;  %v1084_v59 = vand.u32 2147483647, %v828_v48  ;;  %v330_v47 = vld [vmem:[%s1998_s20 + $0x328] sm:$0xff] }
  0xd1   : > { %v586_v48 = vld [vmem:[%s2005_s18 + $0x328] sm:$0xff] }
  0xd2   : > { %v1326_v5 = vadd.f32 %v1325_v0, %v1071_v58  ;;  %v830_v58 = vsub.f32 %v318_v51, %v574_v52  ;;  %v1085_v0 = vand.u32 2147483647, %v829_v53  ;;  %v331_v52 = vld [vmem:[%s1998_s20 + $0x330] sm:$0xff] }
  0xd3   : > { %v587_v53 = vld [vmem:[%s2005_s18 + $0x330] sm:$0xff] }
  0xd4   : > { %v1327_v10 = vadd.f32 %v1326_v5, %v1072_v63  ;;  %v831_v63 = vsub.f32 %v319_v56, %v575_v57  ;;  %v1086_v5 = vand.u32 2147483647, %v830_v58  ;;  %v332_v57 = vld [vmem:[%s1998_s20 + $0x338] sm:$0xff] }
  0xd5   : > { %v588_v58 = vld [vmem:[%s2005_s18 + $0x338] sm:$0xff] }
  0xd6   : > { %v1328_v15 = vadd.f32 %v1327_v10, %v1073_v4  ;;  %v832_v4 = vsub.f32 %v320_v61, %v576_v62  ;;  %v1087_v10 = vand.u32 2147483647, %v831_v63  ;;  %v333_v62 = vld [vmem:[%s1998_s20 + $0x340] sm:$0xff] }
  0xd7   : > { %v589_v63 = vld [vmem:[%s2005_s18 + $0x340] sm:$0xff] }
  0xd8   : > { %v1329_v20 = vadd.f32 %v1328_v15, %v1074_v9  ;;  %v833_v9 = vsub.f32 %v321_v2, %v577_v3  ;;  %v1088_v15 = vand.u32 2147483647, %v832_v4  ;;  %v334_v3 = vld [vmem:[%s1998_s20 + $0x348] sm:$0xff] }
  0xd9   : > { %v590_v4 = vld [vmem:[%s2005_s18 + $0x348] sm:$0xff] }
  0xda   : > { %v1330_v25 = vadd.f32 %v1329_v20, %v1075_v14  ;;  %v834_v14 = vsub.f32 %v322_v7, %v578_v8  ;;  %v1089_v20 = vand.u32 2147483647, %v833_v9  ;;  %v335_v8 = vld [vmem:[%s1998_s20 + $0x350] sm:$0xff] }
  0xdb   : > { %v591_v9 = vld [vmem:[%s2005_s18 + $0x350] sm:$0xff] }
  0xdc   : > { %v1331_v30 = vadd.f32 %v1330_v25, %v1076_v19  ;;  %v835_v19 = vsub.f32 %v323_v12, %v579_v13  ;;  %v1090_v25 = vand.u32 2147483647, %v834_v14  ;;  %v336_v13 = vld [vmem:[%s1998_s20 + $0x358] sm:$0xff] }
  0xdd   : > { %v592_v14 = vld [vmem:[%s2005_s18 + $0x358] sm:$0xff] }
  0xde   : > { %v1332_v35 = vadd.f32 %v1331_v30, %v1077_v24  ;;  %v836_v24 = vsub.f32 %v324_v17, %v580_v18  ;;  %v1091_v30 = vand.u32 2147483647, %v835_v19  ;;  %v337_v18 = vld [vmem:[%s1998_s20 + $0x360] sm:$0xff] }
  0xdf   : > { %v593_v19 = vld [vmem:[%s2005_s18 + $0x360] sm:$0xff] }
  0xe0   : > { %v1333_v40 = vadd.f32 %v1332_v35, %v1078_v29  ;;  %v837_v29 = vsub.f32 %v325_v22, %v581_v23  ;;  %v1092_v35 = vand.u32 2147483647, %v836_v24  ;;  %v338_v23 = vld [vmem:[%s1998_s20 + $0x368] sm:$0xff] }
  0xe1   : > { %v594_v24 = vld [vmem:[%s2005_s18 + $0x368] sm:$0xff] }
  0xe2   : > { %v1334_v45 = vadd.f32 %v1333_v40, %v1079_v34  ;;  %v838_v34 = vsub.f32 %v326_v27, %v582_v28  ;;  %v1093_v40 = vand.u32 2147483647, %v837_v29  ;;  %v339_v28 = vld [vmem:[%s1998_s20 + $0x370] sm:$0xff] }
  0xe3   : > { %v595_v29 = vld [vmem:[%s2005_s18 + $0x370] sm:$0xff] }
  0xe4   : > { %v1335_v50 = vadd.f32 %v1334_v45, %v1080_v39  ;;  %v839_v39 = vsub.f32 %v327_v32, %v583_v33  ;;  %v1094_v45 = vand.u32 2147483647, %v838_v34  ;;  %v340_v33 = vld [vmem:[%s1998_s20 + $0x378] sm:$0xff] }
  0xe5   : > { %v596_v34 = vld [vmem:[%s2005_s18 + $0x378] sm:$0xff] }
  0xe6   : > { %v1336_v55 = vadd.f32 %v1335_v50, %v1081_v44  ;;  %v840_v44 = vsub.f32 %v328_v37, %v584_v38  ;;  %v1095_v50 = vand.u32 2147483647, %v839_v39  ;;  %v341_v38 = vld [vmem:[%s1998_s20 + $0x380] sm:$0xff] }
  0xe7   : > { %v597_v39 = vld [vmem:[%s2005_s18 + $0x380] sm:$0xff] }
  0xe8   : > { %v1337_v60 = vadd.f32 %v1336_v55, %v1082_v49  ;;  %v841_v49 = vsub.f32 %v329_v42, %v585_v43  ;;  %v1096_v55 = vand.u32 2147483647, %v840_v44  ;;  %v342_v43 = vld [vmem:[%s1998_s20 + $0x388] sm:$0xff] }
  0xe9   : > { %v598_v44 = vld [vmem:[%s2005_s18 + $0x388] sm:$0xff] }
  0xea   : > { %v1338_v1 = vadd.f32 %v1337_v60, %v1083_v54  ;;  %v842_v54 = vsub.f32 %v330_v47, %v586_v48  ;;  %v1097_v60 = vand.u32 2147483647, %v841_v49  ;;  %v343_v48 = vld [vmem:[%s1998_s20 + $0x390] sm:$0xff] }
  0xeb   : > { %v599_v49 = vld [vmem:[%s2005_s18 + $0x390] sm:$0xff] }
  0xec   : > { %v1339_v6 = vadd.f32 %v1338_v1, %v1084_v59  ;;  %v843_v59 = vsub.f32 %v331_v52, %v587_v53  ;;  %v1098_v1 = vand.u32 2147483647, %v842_v54  ;;  %v344_v53 = vld [vmem:[%s1998_s20 + $0x398] sm:$0xff] }
  0xed   : > { %v600_v54 = vld [vmem:[%s2005_s18 + $0x398] sm:$0xff] }
  0xee   : > { %v1340_v11 = vadd.f32 %v1339_v6, %v1085_v0  ;;  %v844_v0 = vsub.f32 %v332_v57, %v588_v58  ;;  %v1099_v6 = vand.u32 2147483647, %v843_v59  ;;  %v345_v58 = vld [vmem:[%s1998_s20 + $0x3a0] sm:$0xff] }
  0xef   : > { %v601_v59 = vld [vmem:[%s2005_s18 + $0x3a0] sm:$0xff] }
  0xf0   : > { %v1341_v16 = vadd.f32 %v1340_v11, %v1086_v5  ;;  %v845_v5 = vsub.f32 %v333_v62, %v589_v63  ;;  %v1100_v11 = vand.u32 2147483647, %v844_v0  ;;  %v346_v63 = vld [vmem:[%s1998_s20 + $0x3a8] sm:$0xff] }
  0xf1   : > { %v602_v0 = vld [vmem:[%s2005_s18 + $0x3a8] sm:$0xff] }
  0xf2   : > { %v1342_v21 = vadd.f32 %v1341_v16, %v1087_v10  ;;  %v846_v10 = vsub.f32 %v334_v3, %v590_v4  ;;  %v1101_v16 = vand.u32 2147483647, %v845_v5  ;;  %v347_v4 = vld [vmem:[%s1998_s20 + $0x3b0] sm:$0xff] }
  0xf3   : > { %v603_v5 = vld [vmem:[%s2005_s18 + $0x3b0] sm:$0xff] }
  0xf4   : > { %v1343_v26 = vadd.f32 %v1342_v21, %v1088_v15  ;;  %v847_v15 = vsub.f32 %v335_v8, %v591_v9  ;;  %v1102_v21 = vand.u32 2147483647, %v846_v10  ;;  %v348_v9 = vld [vmem:[%s1998_s20 + $0x3b8] sm:$0xff] }
  0xf5   : > { %v604_v10 = vld [vmem:[%s2005_s18 + $0x3b8] sm:$0xff] }
  0xf6   : > { %v1344_v31 = vadd.f32 %v1343_v26, %v1089_v20  ;;  %v848_v20 = vsub.f32 %v336_v13, %v592_v14  ;;  %v1103_v26 = vand.u32 2147483647, %v847_v15  ;;  %v349_v14 = vld [vmem:[%s1998_s20 + $0x3c0] sm:$0xff] }
  0xf7   : > { %v605_v15 = vld [vmem:[%s2005_s18 + $0x3c0] sm:$0xff] }
  0xf8   : > { %v1345_v36 = vadd.f32 %v1344_v31, %v1090_v25  ;;  %v849_v25 = vsub.f32 %v337_v18, %v593_v19  ;;  %v1104_v31 = vand.u32 2147483647, %v848_v20  ;;  %v350_v19 = vld [vmem:[%s1998_s20 + $0x3c8] sm:$0xff] }
  0xf9   : > { %v606_v20 = vld [vmem:[%s2005_s18 + $0x3c8] sm:$0xff] }
  0xfa   : > { %v1346_v41 = vadd.f32 %v1345_v36, %v1091_v30  ;;  %v850_v30 = vsub.f32 %v338_v23, %v594_v24  ;;  %v1105_v36 = vand.u32 2147483647, %v849_v25  ;;  %v351_v24 = vld [vmem:[%s1998_s20 + $0x3d0] sm:$0xff] }
  0xfb   : > { %v607_v25 = vld [vmem:[%s2005_s18 + $0x3d0] sm:$0xff] }
  0xfc   : > { %v1347_v46 = vadd.f32 %v1346_v41, %v1092_v35  ;;  %v851_v35 = vsub.f32 %v339_v28, %v595_v29  ;;  %v1106_v41 = vand.u32 2147483647, %v850_v30  ;;  %v352_v29 = vld [vmem:[%s1998_s20 + $0x3d8] sm:$0xff] }
  0xfd   : > { %v608_v30 = vld [vmem:[%s2005_s18 + $0x3d8] sm:$0xff] }
  0xfe   : > { %v1348_v51 = vadd.f32 %v1347_v46, %v1093_v40  ;;  %v852_v40 = vsub.f32 %v340_v33, %v596_v34  ;;  %v1107_v46 = vand.u32 2147483647, %v851_v35  ;;  %v353_v34 = vld [vmem:[%s1998_s20 + $0x3e0] sm:$0xff] }
  0xff   : > { %v609_v35 = vld [vmem:[%s2005_s18 + $0x3e0] sm:$0xff] }
 0x100   : > { %v1349_v56 = vadd.f32 %v1348_v51, %v1094_v45  ;;  %v853_v45 = vsub.f32 %v341_v38, %v597_v39  ;;  %v1108_v51 = vand.u32 2147483647, %v852_v40  ;;  %v354_v39 = vld [vmem:[%s1998_s20 + $0x3e8] sm:$0xff] }
 0x101   : > { %v610_v40 = vld [vmem:[%s2005_s18 + $0x3e8] sm:$0xff] }
 0x102   : > { %v1350_v61 = vadd.f32 %v1349_v56, %v1095_v50  ;;  %v854_v50 = vsub.f32 %v342_v43, %v598_v44  ;;  %v1109_v56 = vand.u32 2147483647, %v853_v45  ;;  %v355_v44 = vld [vmem:[%s1998_s20 + $0x3f0] sm:$0xff] }
 0x103   : > { %v611_v45 = vld [vmem:[%s2005_s18 + $0x3f0] sm:$0xff] }
 0x104   : > { %v1351_v2 = vadd.f32 %v1350_v61, %v1096_v55  ;;  %v855_v55 = vsub.f32 %v343_v48, %v599_v49  ;;  %v1110_v61 = vand.u32 2147483647, %v854_v50  ;;  %v356_v49 = vld [vmem:[%s1998_s20 + $0x3f8] sm:$0xff] }
 0x105   : > { %v612_v50 = vld [vmem:[%s2005_s18 + $0x3f8] sm:$0xff] }
 0x106   : > { %v1352_v7 = vadd.f32 %v1351_v2, %v1097_v60  ;;  %v856_v60 = vsub.f32 %v344_v53, %v600_v54  ;;  %v1111_v2 = vand.u32 2147483647, %v855_v55  ;;  %v357_v54 = vld [vmem:[%s1998_s20 + $0x400] sm:$0xff] }
 0x107   : > { %v613_v55 = vld [vmem:[%s2005_s18 + $0x400] sm:$0xff] }
 0x108   : > { %v1353_v12 = vadd.f32 %v1352_v7, %v1098_v1  ;;  %v857_v1 = vsub.f32 %v345_v58, %v601_v59  ;;  %v1112_v7 = vand.u32 2147483647, %v856_v60  ;;  %v358_v59 = vld [vmem:[%s1998_s20 + $0x408] sm:$0xff] }
 0x109   : > { %v614_v60 = vld [vmem:[%s2005_s18 + $0x408] sm:$0xff] }
 0x10a   : > { %v1354_v17 = vadd.f32 %v1353_v12, %v1099_v6  ;;  %v858_v6 = vsub.f32 %v346_v63, %v602_v0  ;;  %v1113_v12 = vand.u32 2147483647, %v857_v1  ;;  %v359_v0 = vld [vmem:[%s1998_s20 + $0x410] sm:$0xff] }
 0x10b   : > { %v615_v1 = vld [vmem:[%s2005_s18 + $0x410] sm:$0xff] }
 0x10c   : > { %v1355_v22 = vadd.f32 %v1354_v17, %v1100_v11  ;;  %v859_v11 = vsub.f32 %v347_v4, %v603_v5  ;;  %v1114_v17 = vand.u32 2147483647, %v858_v6  ;;  %v360_v5 = vld [vmem:[%s1998_s20 + $0x418] sm:$0xff] }
 0x10d   : > { %v616_v6 = vld [vmem:[%s2005_s18 + $0x418] sm:$0xff] }
 0x10e   : > { %v1356_v27 = vadd.f32 %v1355_v22, %v1101_v16  ;;  %v860_v16 = vsub.f32 %v348_v9, %v604_v10  ;;  %v1115_v22 = vand.u32 2147483647, %v859_v11  ;;  %v361_v10 = vld [vmem:[%s1998_s20 + $0x420] sm:$0xff] }
 0x10f   : > { %v617_v11 = vld [vmem:[%s2005_s18 + $0x420] sm:$0xff] }
 0x110   : > { %v1357_v32 = vadd.f32 %v1356_v27, %v1102_v21  ;;  %v861_v21 = vsub.f32 %v349_v14, %v605_v15  ;;  %v1116_v27 = vand.u32 2147483647, %v860_v16  ;;  %v362_v15 = vld [vmem:[%s1998_s20 + $0x428] sm:$0xff] }
 0x111   : > { %v618_v16 = vld [vmem:[%s2005_s18 + $0x428] sm:$0xff] }
 0x112   : > { %v1358_v37 = vadd.f32 %v1357_v32, %v1103_v26  ;;  %v862_v26 = vsub.f32 %v350_v19, %v606_v20  ;;  %v1117_v32 = vand.u32 2147483647, %v861_v21  ;;  %v363_v20 = vld [vmem:[%s1998_s20 + $0x430] sm:$0xff] }
 0x113   : > { %v619_v21 = vld [vmem:[%s2005_s18 + $0x430] sm:$0xff] }
 0x114   : > { %v1359_v42 = vadd.f32 %v1358_v37, %v1104_v31  ;;  %v863_v31 = vsub.f32 %v351_v24, %v607_v25  ;;  %v1118_v37 = vand.u32 2147483647, %v862_v26  ;;  %v364_v25 = vld [vmem:[%s1998_s20 + $0x438] sm:$0xff] }
 0x115   : > { %v620_v26 = vld [vmem:[%s2005_s18 + $0x438] sm:$0xff] }
 0x116   : > { %v1360_v47 = vadd.f32 %v1359_v42, %v1105_v36  ;;  %v864_v36 = vsub.f32 %v352_v29, %v608_v30  ;;  %v1119_v42 = vand.u32 2147483647, %v863_v31  ;;  %v365_v30 = vld [vmem:[%s1998_s20 + $0x440] sm:$0xff] }
 0x117   : > { %v621_v31 = vld [vmem:[%s2005_s18 + $0x440] sm:$0xff] }
 0x118   : > { %v1361_v52 = vadd.f32 %v1360_v47, %v1106_v41  ;;  %v865_v41 = vsub.f32 %v353_v34, %v609_v35  ;;  %v1120_v47 = vand.u32 2147483647, %v864_v36  ;;  %v366_v35 = vld [vmem:[%s1998_s20 + $0x448] sm:$0xff] }
 0x119   : > { %v622_v36 = vld [vmem:[%s2005_s18 + $0x448] sm:$0xff] }
 0x11a   : > { %v1362_v57 = vadd.f32 %v1361_v52, %v1107_v46  ;;  %v866_v46 = vsub.f32 %v354_v39, %v610_v40  ;;  %v1121_v52 = vand.u32 2147483647, %v865_v41  ;;  %v367_v40 = vld [vmem:[%s1998_s20 + $0x450] sm:$0xff] }
 0x11b   : > { %v623_v41 = vld [vmem:[%s2005_s18 + $0x450] sm:$0xff] }
 0x11c   : > { %v1363_v62 = vadd.f32 %v1362_v57, %v1108_v51  ;;  %v867_v51 = vsub.f32 %v355_v44, %v611_v45  ;;  %v1122_v57 = vand.u32 2147483647, %v866_v46  ;;  %v368_v45 = vld [vmem:[%s1998_s20 + $0x458] sm:$0xff] }
 0x11d   : > { %v624_v46 = vld [vmem:[%s2005_s18 + $0x458] sm:$0xff] }
 0x11e   : > { %v1364_v3 = vadd.f32 %v1363_v62, %v1109_v56  ;;  %v868_v56 = vsub.f32 %v356_v49, %v612_v50  ;;  %v1123_v62 = vand.u32 2147483647, %v867_v51  ;;  %v369_v50 = vld [vmem:[%s1998_s20 + $0x460] sm:$0xff] }
 0x11f   : > { %v625_v51 = vld [vmem:[%s2005_s18 + $0x460] sm:$0xff] }
 0x120   : > { %v1365_v8 = vadd.f32 %v1364_v3, %v1110_v61  ;;  %v869_v61 = vsub.f32 %v357_v54, %v613_v55  ;;  %v1124_v3 = vand.u32 2147483647, %v868_v56  ;;  %v370_v55 = vld [vmem:[%s1998_s20 + $0x468] sm:$0xff] }
 0x121   : > { %v626_v56 = vld [vmem:[%s2005_s18 + $0x468] sm:$0xff] }
 0x122   : > { %v1366_v13 = vadd.f32 %v1365_v8, %v1111_v2  ;;  %v870_v2 = vsub.f32 %v358_v59, %v614_v60  ;;  %v1125_v8 = vand.u32 2147483647, %v869_v61  ;;  %v371_v60 = vld [vmem:[%s1998_s20 + $0x470] sm:$0xff] }
 0x123   : > { %v627_v61 = vld [vmem:[%s2005_s18 + $0x470] sm:$0xff] }
 0x124   : > { %v1367_v18 = vadd.f32 %v1366_v13, %v1112_v7  ;;  %v871_v7 = vsub.f32 %v359_v0, %v615_v1  ;;  %v1126_v13 = vand.u32 2147483647, %v870_v2  ;;  %v372_v1 = vld [vmem:[%s1998_s20 + $0x478] sm:$0xff] }
 0x125   : > { %v628_v2 = vld [vmem:[%s2005_s18 + $0x478] sm:$0xff] }
 0x126   : > { %v1368_v23 = vadd.f32 %v1367_v18, %v1113_v12  ;;  %v872_v12 = vsub.f32 %v360_v5, %v616_v6  ;;  %v1127_v18 = vand.u32 2147483647, %v871_v7  ;;  %v373_v6 = vld [vmem:[%s1998_s20 + $0x480] sm:$0xff] }
 0x127   : > { %v629_v7 = vld [vmem:[%s2005_s18 + $0x480] sm:$0xff] }
 0x128   : > { %v1369_v28 = vadd.f32 %v1368_v23, %v1114_v17  ;;  %v873_v17 = vsub.f32 %v361_v10, %v617_v11  ;;  %v1128_v23 = vand.u32 2147483647, %v872_v12  ;;  %v374_v11 = vld [vmem:[%s1998_s20 + $0x488] sm:$0xff] }
 0x129   : > { %v630_v12 = vld [vmem:[%s2005_s18 + $0x488] sm:$0xff] }
 0x12a   : > { %v1370_v33 = vadd.f32 %v1369_v28, %v1115_v22  ;;  %v874_v22 = vsub.f32 %v362_v15, %v618_v16  ;;  %v1129_v28 = vand.u32 2147483647, %v873_v17  ;;  %v375_v16 = vld [vmem:[%s1998_s20 + $0x490] sm:$0xff] }
 0x12b   : > { %v631_v17 = vld [vmem:[%s2005_s18 + $0x490] sm:$0xff] }
 0x12c   : > { %v1371_v38 = vadd.f32 %v1370_v33, %v1116_v27  ;;  %v875_v27 = vsub.f32 %v363_v20, %v619_v21  ;;  %v1130_v33 = vand.u32 2147483647, %v874_v22  ;;  %v376_v21 = vld [vmem:[%s1998_s20 + $0x498] sm:$0xff] }
 0x12d   : > { %v632_v22 = vld [vmem:[%s2005_s18 + $0x498] sm:$0xff] }
 0x12e   : > { %v1372_v43 = vadd.f32 %v1371_v38, %v1117_v32  ;;  %v876_v32 = vsub.f32 %v364_v25, %v620_v26  ;;  %v1131_v38 = vand.u32 2147483647, %v875_v27  ;;  %v377_v26 = vld [vmem:[%s1998_s20 + $0x4a0] sm:$0xff] }
 0x12f   : > { %v633_v27 = vld [vmem:[%s2005_s18 + $0x4a0] sm:$0xff] }
 0x130   : > { %v1373_v48 = vadd.f32 %v1372_v43, %v1118_v37  ;;  %v877_v37 = vsub.f32 %v365_v30, %v621_v31  ;;  %v1132_v43 = vand.u32 2147483647, %v876_v32  ;;  %v378_v31 = vld [vmem:[%s1998_s20 + $0x4a8] sm:$0xff] }
 0x131   : > { %v634_v32 = vld [vmem:[%s2005_s18 + $0x4a8] sm:$0xff] }
 0x132   : > { %v1374_v53 = vadd.f32 %v1373_v48, %v1119_v42  ;;  %v878_v42 = vsub.f32 %v366_v35, %v622_v36  ;;  %v1133_v48 = vand.u32 2147483647, %v877_v37  ;;  %v379_v36 = vld [vmem:[%s1998_s20 + $0x4b0] sm:$0xff] }
 0x133   : > { %v635_v37 = vld [vmem:[%s2005_s18 + $0x4b0] sm:$0xff] }
 0x134   : > { %v1375_v58 = vadd.f32 %v1374_v53, %v1120_v47  ;;  %v879_v47 = vsub.f32 %v367_v40, %v623_v41  ;;  %v1134_v53 = vand.u32 2147483647, %v878_v42  ;;  %v380_v41 = vld [vmem:[%s1998_s20 + $0x4b8] sm:$0xff] }
 0x135   : > { %v636_v42 = vld [vmem:[%s2005_s18 + $0x4b8] sm:$0xff] }
 0x136   : > { %v1376_v63 = vadd.f32 %v1375_v58, %v1121_v52  ;;  %v880_v52 = vsub.f32 %v368_v45, %v624_v46  ;;  %v1135_v58 = vand.u32 2147483647, %v879_v47  ;;  %v381_v46 = vld [vmem:[%s1998_s20 + $0x4c0] sm:$0xff] }
 0x137   : > { %v637_v47 = vld [vmem:[%s2005_s18 + $0x4c0] sm:$0xff] }
 0x138   : > { %v1377_v4 = vadd.f32 %v1376_v63, %v1122_v57  ;;  %v881_v57 = vsub.f32 %v369_v50, %v625_v51  ;;  %v1136_v63 = vand.u32 2147483647, %v880_v52  ;;  %v382_v51 = vld [vmem:[%s1998_s20 + $0x4c8] sm:$0xff] }
 0x139   : > { %v638_v52 = vld [vmem:[%s2005_s18 + $0x4c8] sm:$0xff] }
 0x13a   : > { %v1378_v9 = vadd.f32 %v1377_v4, %v1123_v62  ;;  %v882_v62 = vsub.f32 %v370_v55, %v626_v56  ;;  %v1137_v4 = vand.u32 2147483647, %v881_v57  ;;  %v383_v56 = vld [vmem:[%s1998_s20 + $0x4d0] sm:$0xff] }
 0x13b   : > { %v639_v57 = vld [vmem:[%s2005_s18 + $0x4d0] sm:$0xff] }
 0x13c   : > { %v1379_v14 = vadd.f32 %v1378_v9, %v1124_v3  ;;  %v883_v3 = vsub.f32 %v371_v60, %v627_v61  ;;  %v1138_v9 = vand.u32 2147483647, %v882_v62  ;;  %v384_v61 = vld [vmem:[%s1998_s20 + $0x4d8] sm:$0xff] }
 0x13d   : > { %v640_v62 = vld [vmem:[%s2005_s18 + $0x4d8] sm:$0xff] }
 0x13e   : > { %v1380_v19 = vadd.f32 %v1379_v14, %v1125_v8  ;;  %v884_v8 = vsub.f32 %v372_v1, %v628_v2  ;;  %v1139_v14 = vand.u32 2147483647, %v883_v3  ;;  %v385_v2 = vld [vmem:[%s1998_s20 + $0x4e0] sm:$0xff] }
 0x13f   : > { %v641_v3 = vld [vmem:[%s2005_s18 + $0x4e0] sm:$0xff] }
 0x140   : > { %v1381_v24 = vadd.f32 %v1380_v19, %v1126_v13  ;;  %v885_v13 = vsub.f32 %v373_v6, %v629_v7  ;;  %v1140_v19 = vand.u32 2147483647, %v884_v8  ;;  %v386_v7 = vld [vmem:[%s1998_s20 + $0x4e8] sm:$0xff] }
 0x141   : > { %v642_v8 = vld [vmem:[%s2005_s18 + $0x4e8] sm:$0xff] }
 0x142   : > { %v1382_v29 = vadd.f32 %v1381_v24, %v1127_v18  ;;  %v886_v18 = vsub.f32 %v374_v11, %v630_v12  ;;  %v1141_v24 = vand.u32 2147483647, %v885_v13  ;;  %v387_v12 = vld [vmem:[%s1998_s20 + $0x4f0] sm:$0xff] }
 0x143   : > { %v643_v13 = vld [vmem:[%s2005_s18 + $0x4f0] sm:$0xff] }
 0x144   : > { %v1383_v34 = vadd.f32 %v1382_v29, %v1128_v23  ;;  %v887_v23 = vsub.f32 %v375_v16, %v631_v17  ;;  %v1142_v29 = vand.u32 2147483647, %v886_v18  ;;  %v388_v17 = vld [vmem:[%s1998_s20 + $0x4f8] sm:$0xff] }
 0x145   : > { %v644_v18 = vld [vmem:[%s2005_s18 + $0x4f8] sm:$0xff] }
 0x146   : > { %v1384_v39 = vadd.f32 %v1383_v34, %v1129_v28  ;;  %v888_v28 = vsub.f32 %v376_v21, %v632_v22  ;;  %v1143_v34 = vand.u32 2147483647, %v887_v23  ;;  %v389_v22 = vld [vmem:[%s1998_s20 + $0x500] sm:$0xff] }
 0x147   : > { %v645_v23 = vld [vmem:[%s2005_s18 + $0x500] sm:$0xff] }
 0x148   : > { %v1385_v44 = vadd.f32 %v1384_v39, %v1130_v33  ;;  %v889_v33 = vsub.f32 %v377_v26, %v633_v27  ;;  %v1144_v39 = vand.u32 2147483647, %v888_v28  ;;  %v390_v27 = vld [vmem:[%s1998_s20 + $0x508] sm:$0xff] }
 0x149   : > { %v646_v28 = vld [vmem:[%s2005_s18 + $0x508] sm:$0xff] }
 0x14a   : > { %v1386_v49 = vadd.f32 %v1385_v44, %v1131_v38  ;;  %v890_v38 = vsub.f32 %v378_v31, %v634_v32  ;;  %v1145_v44 = vand.u32 2147483647, %v889_v33  ;;  %v391_v32 = vld [vmem:[%s1998_s20 + $0x510] sm:$0xff] }
 0x14b   : > { %v647_v33 = vld [vmem:[%s2005_s18 + $0x510] sm:$0xff] }
 0x14c   : > { %v1387_v54 = vadd.f32 %v1386_v49, %v1132_v43  ;;  %v891_v43 = vsub.f32 %v379_v36, %v635_v37  ;;  %v1146_v49 = vand.u32 2147483647, %v890_v38  ;;  %v392_v37 = vld [vmem:[%s1998_s20 + $0x518] sm:$0xff] }
 0x14d   : > { %v648_v38 = vld [vmem:[%s2005_s18 + $0x518] sm:$0xff] }
 0x14e   : > { %v1388_v59 = vadd.f32 %v1387_v54, %v1133_v48  ;;  %v892_v48 = vsub.f32 %v380_v41, %v636_v42  ;;  %v1147_v54 = vand.u32 2147483647, %v891_v43  ;;  %v393_v42 = vld [vmem:[%s1998_s20 + $0x520] sm:$0xff] }
 0x14f   : > { %v649_v43 = vld [vmem:[%s2005_s18 + $0x520] sm:$0xff] }
 0x150   : > { %v1389_v0 = vadd.f32 %v1388_v59, %v1134_v53  ;;  %v893_v53 = vsub.f32 %v381_v46, %v637_v47  ;;  %v1148_v59 = vand.u32 2147483647, %v892_v48  ;;  %v394_v47 = vld [vmem:[%s1998_s20 + $0x528] sm:$0xff] }
 0x151   : > { %v650_v48 = vld [vmem:[%s2005_s18 + $0x528] sm:$0xff] }
 0x152   : > { %v1390_v5 = vadd.f32 %v1389_v0, %v1135_v58  ;;  %v894_v58 = vsub.f32 %v382_v51, %v638_v52  ;;  %v1149_v0 = vand.u32 2147483647, %v893_v53  ;;  %v395_v52 = vld [vmem:[%s1998_s20 + $0x530] sm:$0xff] }
 0x153   : > { %v651_v53 = vld [vmem:[%s2005_s18 + $0x530] sm:$0xff] }
 0x154   : > { %v1391_v10 = vadd.f32 %v1390_v5, %v1136_v63  ;;  %v895_v63 = vsub.f32 %v383_v56, %v639_v57  ;;  %v1150_v5 = vand.u32 2147483647, %v894_v58  ;;  %v396_v57 = vld [vmem:[%s1998_s20 + $0x538] sm:$0xff] }
 0x155   : > { %v652_v58 = vld [vmem:[%s2005_s18 + $0x538] sm:$0xff] }
 0x156   : > { %v1392_v15 = vadd.f32 %v1391_v10, %v1137_v4  ;;  %v896_v4 = vsub.f32 %v384_v61, %v640_v62  ;;  %v1151_v10 = vand.u32 2147483647, %v895_v63  ;;  %v397_v62 = vld [vmem:[%s1998_s20 + $0x540] sm:$0xff] }
 0x157   : > { %v653_v63 = vld [vmem:[%s2005_s18 + $0x540] sm:$0xff] }
 0x158   : > { %v1393_v20 = vadd.f32 %v1392_v15, %v1138_v9  ;;  %v897_v9 = vsub.f32 %v385_v2, %v641_v3  ;;  %v1152_v15 = vand.u32 2147483647, %v896_v4  ;;  %v398_v3 = vld [vmem:[%s1998_s20 + $0x548] sm:$0xff] }
 0x159   : > { %v654_v4 = vld [vmem:[%s2005_s18 + $0x548] sm:$0xff] }
 0x15a   : > { %v1394_v25 = vadd.f32 %v1393_v20, %v1139_v14  ;;  %v898_v14 = vsub.f32 %v386_v7, %v642_v8  ;;  %v1153_v20 = vand.u32 2147483647, %v897_v9  ;;  %v399_v8 = vld [vmem:[%s1998_s20 + $0x550] sm:$0xff] }
 0x15b   : > { %v655_v9 = vld [vmem:[%s2005_s18 + $0x550] sm:$0xff] }
 0x15c   : > { %v1395_v30 = vadd.f32 %v1394_v25, %v1140_v19  ;;  %v899_v19 = vsub.f32 %v387_v12, %v643_v13  ;;  %v1154_v25 = vand.u32 2147483647, %v898_v14  ;;  %v400_v13 = vld [vmem:[%s1998_s20 + $0x558] sm:$0xff] }
 0x15d   : > { %v656_v14 = vld [vmem:[%s2005_s18 + $0x558] sm:$0xff] }
 0x15e   : > { %v1396_v35 = vadd.f32 %v1395_v30, %v1141_v24  ;;  %v900_v24 = vsub.f32 %v388_v17, %v644_v18  ;;  %v1155_v30 = vand.u32 2147483647, %v899_v19  ;;  %v401_v18 = vld [vmem:[%s1998_s20 + $0x560] sm:$0xff] }
 0x15f   : > { %v657_v19 = vld [vmem:[%s2005_s18 + $0x560] sm:$0xff] }
 0x160   : > { %v1397_v40 = vadd.f32 %v1396_v35, %v1142_v29  ;;  %v901_v29 = vsub.f32 %v389_v22, %v645_v23  ;;  %v1156_v35 = vand.u32 2147483647, %v900_v24  ;;  %v402_v23 = vld [vmem:[%s1998_s20 + $0x568] sm:$0xff] }
 0x161   : > { %v658_v24 = vld [vmem:[%s2005_s18 + $0x568] sm:$0xff] }
 0x162   : > { %v1398_v45 = vadd.f32 %v1397_v40, %v1143_v34  ;;  %v902_v34 = vsub.f32 %v390_v27, %v646_v28  ;;  %v1157_v40 = vand.u32 2147483647, %v901_v29  ;;  %v403_v28 = vld [vmem:[%s1998_s20 + $0x570] sm:$0xff] }
 0x163   : > { %v659_v29 = vld [vmem:[%s2005_s18 + $0x570] sm:$0xff] }
 0x164   : > { %v1399_v50 = vadd.f32 %v1398_v45, %v1144_v39  ;;  %v903_v39 = vsub.f32 %v391_v32, %v647_v33  ;;  %v1158_v45 = vand.u32 2147483647, %v902_v34  ;;  %v404_v33 = vld [vmem:[%s1998_s20 + $0x578] sm:$0xff] }
 0x165   : > { %v660_v34 = vld [vmem:[%s2005_s18 + $0x578] sm:$0xff] }
 0x166   : > { %v1400_v55 = vadd.f32 %v1399_v50, %v1145_v44  ;;  %v904_v44 = vsub.f32 %v392_v37, %v648_v38  ;;  %v1159_v50 = vand.u32 2147483647, %v903_v39  ;;  %v405_v38 = vld [vmem:[%s1998_s20 + $0x580] sm:$0xff] }
 0x167   : > { %v661_v39 = vld [vmem:[%s2005_s18 + $0x580] sm:$0xff] }
 0x168   : > { %v1401_v60 = vadd.f32 %v1400_v55, %v1146_v49  ;;  %v905_v49 = vsub.f32 %v393_v42, %v649_v43  ;;  %v1160_v55 = vand.u32 2147483647, %v904_v44  ;;  %v406_v43 = vld [vmem:[%s1998_s20 + $0x588] sm:$0xff] }
 0x169   : > { %v662_v44 = vld [vmem:[%s2005_s18 + $0x588] sm:$0xff] }
 0x16a   : > { %v1402_v1 = vadd.f32 %v1401_v60, %v1147_v54  ;;  %v906_v54 = vsub.f32 %v394_v47, %v650_v48  ;;  %v1161_v60 = vand.u32 2147483647, %v905_v49  ;;  %v407_v48 = vld [vmem:[%s1998_s20 + $0x590] sm:$0xff] }
 0x16b   : > { %v663_v49 = vld [vmem:[%s2005_s18 + $0x590] sm:$0xff] }
 0x16c   : > { %v1403_v6 = vadd.f32 %v1402_v1, %v1148_v59  ;;  %v907_v59 = vsub.f32 %v395_v52, %v651_v53  ;;  %v1162_v1 = vand.u32 2147483647, %v906_v54  ;;  %v408_v53 = vld [vmem:[%s1998_s20 + $0x598] sm:$0xff] }
 0x16d   : > { %v664_v54 = vld [vmem:[%s2005_s18 + $0x598] sm:$0xff] }
 0x16e   : > { %v1404_v11 = vadd.f32 %v1403_v6, %v1149_v0  ;;  %v908_v0 = vsub.f32 %v396_v57, %v652_v58  ;;  %v1163_v6 = vand.u32 2147483647, %v907_v59  ;;  %v409_v58 = vld [vmem:[%s1998_s20 + $0x5a0] sm:$0xff] }
 0x16f   : > { %v665_v59 = vld [vmem:[%s2005_s18 + $0x5a0] sm:$0xff] }
 0x170   : > { %v1405_v16 = vadd.f32 %v1404_v11, %v1150_v5  ;;  %v909_v5 = vsub.f32 %v397_v62, %v653_v63  ;;  %v1164_v11 = vand.u32 2147483647, %v908_v0  ;;  %v410_v63 = vld [vmem:[%s1998_s20 + $0x5a8] sm:$0xff] }
 0x171   : > { %v666_v0 = vld [vmem:[%s2005_s18 + $0x5a8] sm:$0xff] }
 0x172   : > { %v1406_v21 = vadd.f32 %v1405_v16, %v1151_v10  ;;  %v910_v10 = vsub.f32 %v398_v3, %v654_v4  ;;  %v1165_v16 = vand.u32 2147483647, %v909_v5  ;;  %v411_v4 = vld [vmem:[%s1998_s20 + $0x5b0] sm:$0xff] }
 0x173   : > { %v667_v5 = vld [vmem:[%s2005_s18 + $0x5b0] sm:$0xff] }
 0x174   : > { %v1407_v26 = vadd.f32 %v1406_v21, %v1152_v15  ;;  %v911_v15 = vsub.f32 %v399_v8, %v655_v9  ;;  %v1166_v21 = vand.u32 2147483647, %v910_v10  ;;  %v412_v9 = vld [vmem:[%s1998_s20 + $0x5b8] sm:$0xff] }
 0x175   : > { %v668_v10 = vld [vmem:[%s2005_s18 + $0x5b8] sm:$0xff] }
 0x176   : > { %v1408_v31 = vadd.f32 %v1407_v26, %v1153_v20  ;;  %v912_v20 = vsub.f32 %v400_v13, %v656_v14  ;;  %v1167_v26 = vand.u32 2147483647, %v911_v15  ;;  %v413_v14 = vld [vmem:[%s1998_s20 + $0x5c0] sm:$0xff] }
 0x177   : > { %v669_v15 = vld [vmem:[%s2005_s18 + $0x5c0] sm:$0xff] }
 0x178   : > { %v1409_v36 = vadd.f32 %v1408_v31, %v1154_v25  ;;  %v913_v25 = vsub.f32 %v401_v18, %v657_v19  ;;  %v1168_v31 = vand.u32 2147483647, %v912_v20  ;;  %v414_v19 = vld [vmem:[%s1998_s20 + $0x5c8] sm:$0xff] }
 0x179   : > { %v670_v20 = vld [vmem:[%s2005_s18 + $0x5c8] sm:$0xff] }
 0x17a   : > { %v1410_v41 = vadd.f32 %v1409_v36, %v1155_v30  ;;  %v914_v30 = vsub.f32 %v402_v23, %v658_v24  ;;  %v1169_v36 = vand.u32 2147483647, %v913_v25  ;;  %v415_v24 = vld [vmem:[%s1998_s20 + $0x5d0] sm:$0xff] }
 0x17b   : > { %v671_v25 = vld [vmem:[%s2005_s18 + $0x5d0] sm:$0xff] }
 0x17c   : > { %v1411_v46 = vadd.f32 %v1410_v41, %v1156_v35  ;;  %v915_v35 = vsub.f32 %v403_v28, %v659_v29  ;;  %v1170_v41 = vand.u32 2147483647, %v914_v30  ;;  %v416_v29 = vld [vmem:[%s1998_s20 + $0x5d8] sm:$0xff] }
 0x17d   : > { %v672_v30 = vld [vmem:[%s2005_s18 + $0x5d8] sm:$0xff] }
 0x17e   : > { %v1412_v51 = vadd.f32 %v1411_v46, %v1157_v40  ;;  %v916_v40 = vsub.f32 %v404_v33, %v660_v34  ;;  %v1171_v46 = vand.u32 2147483647, %v915_v35  ;;  %v417_v34 = vld [vmem:[%s1998_s20 + $0x5e0] sm:$0xff] }
 0x17f   : > { %v673_v35 = vld [vmem:[%s2005_s18 + $0x5e0] sm:$0xff] }
 0x180   : > { %v1413_v56 = vadd.f32 %v1412_v51, %v1158_v45  ;;  %v917_v45 = vsub.f32 %v405_v38, %v661_v39  ;;  %v1172_v51 = vand.u32 2147483647, %v916_v40  ;;  %v418_v39 = vld [vmem:[%s1998_s20 + $0x5e8] sm:$0xff] }
 0x181   : > { %v674_v40 = vld [vmem:[%s2005_s18 + $0x5e8] sm:$0xff] }
 0x182   : > { %v1414_v61 = vadd.f32 %v1413_v56, %v1159_v50  ;;  %v918_v50 = vsub.f32 %v406_v43, %v662_v44  ;;  %v1173_v56 = vand.u32 2147483647, %v917_v45  ;;  %v419_v44 = vld [vmem:[%s1998_s20 + $0x5f0] sm:$0xff] }
 0x183   : > { %v675_v45 = vld [vmem:[%s2005_s18 + $0x5f0] sm:$0xff] }
 0x184   : > { %v1415_v2 = vadd.f32 %v1414_v61, %v1160_v55  ;;  %v919_v55 = vsub.f32 %v407_v48, %v663_v49  ;;  %v1174_v61 = vand.u32 2147483647, %v918_v50  ;;  %v420_v49 = vld [vmem:[%s1998_s20 + $0x5f8] sm:$0xff] }
 0x185   : > { %v676_v50 = vld [vmem:[%s2005_s18 + $0x5f8] sm:$0xff] }
 0x186   : > { %v1416_v7 = vadd.f32 %v1415_v2, %v1161_v60  ;;  %v920_v60 = vsub.f32 %v408_v53, %v664_v54  ;;  %v1175_v2 = vand.u32 2147483647, %v919_v55  ;;  %v421_v54 = vld [vmem:[%s1998_s20 + $0x600] sm:$0xff] }
 0x187   : > { %v677_v55 = vld [vmem:[%s2005_s18 + $0x600] sm:$0xff] }
 0x188   : > { %v1417_v12 = vadd.f32 %v1416_v7, %v1162_v1  ;;  %v921_v1 = vsub.f32 %v409_v58, %v665_v59  ;;  %v1176_v7 = vand.u32 2147483647, %v920_v60  ;;  %v422_v59 = vld [vmem:[%s1998_s20 + $0x608] sm:$0xff] }
 0x189   : > { %v678_v60 = vld [vmem:[%s2005_s18 + $0x608] sm:$0xff] }
 0x18a   : > { %v1418_v17 = vadd.f32 %v1417_v12, %v1163_v6  ;;  %v922_v6 = vsub.f32 %v410_v63, %v666_v0  ;;  %v1177_v12 = vand.u32 2147483647, %v921_v1  ;;  %v423_v0 = vld [vmem:[%s1998_s20 + $0x610] sm:$0xff] }
 0x18b   : > { %v679_v1 = vld [vmem:[%s2005_s18 + $0x610] sm:$0xff] }
 0x18c   : > { %v1419_v22 = vadd.f32 %v1418_v17, %v1164_v11  ;;  %v923_v11 = vsub.f32 %v411_v4, %v667_v5  ;;  %v1178_v17 = vand.u32 2147483647, %v922_v6  ;;  %v424_v5 = vld [vmem:[%s1998_s20 + $0x618] sm:$0xff] }
 0x18d   : > { %v680_v6 = vld [vmem:[%s2005_s18 + $0x618] sm:$0xff] }
 0x18e   : > { %v1420_v27 = vadd.f32 %v1419_v22, %v1165_v16  ;;  %v924_v16 = vsub.f32 %v412_v9, %v668_v10  ;;  %v1179_v22 = vand.u32 2147483647, %v923_v11  ;;  %v425_v10 = vld [vmem:[%s1998_s20 + $0x620] sm:$0xff] }
 0x18f   : > { %v681_v11 = vld [vmem:[%s2005_s18 + $0x620] sm:$0xff] }
 0x190   : > { %v1421_v32 = vadd.f32 %v1420_v27, %v1166_v21  ;;  %v925_v21 = vsub.f32 %v413_v14, %v669_v15  ;;  %v1180_v27 = vand.u32 2147483647, %v924_v16  ;;  %v426_v15 = vld [vmem:[%s1998_s20 + $0x628] sm:$0xff] }
 0x191   : > { %v682_v16 = vld [vmem:[%s2005_s18 + $0x628] sm:$0xff] }
 0x192   : > { %v1422_v37 = vadd.f32 %v1421_v32, %v1167_v26  ;;  %v926_v26 = vsub.f32 %v414_v19, %v670_v20  ;;  %v1181_v32 = vand.u32 2147483647, %v925_v21  ;;  %v427_v20 = vld [vmem:[%s1998_s20 + $0x630] sm:$0xff] }
 0x193   : > { %v683_v21 = vld [vmem:[%s2005_s18 + $0x630] sm:$0xff] }
 0x194   : > { %v1423_v42 = vadd.f32 %v1422_v37, %v1168_v31  ;;  %v927_v31 = vsub.f32 %v415_v24, %v671_v25  ;;  %v1182_v37 = vand.u32 2147483647, %v926_v26  ;;  %v428_v25 = vld [vmem:[%s1998_s20 + $0x638] sm:$0xff] }
 0x195   : > { %v684_v26 = vld [vmem:[%s2005_s18 + $0x638] sm:$0xff] }
 0x196   : > { %v1424_v47 = vadd.f32 %v1423_v42, %v1169_v36  ;;  %v928_v36 = vsub.f32 %v416_v29, %v672_v30  ;;  %v1183_v42 = vand.u32 2147483647, %v927_v31  ;;  %v429_v30 = vld [vmem:[%s1998_s20 + $0x640] sm:$0xff] }
 0x197   : > { %v685_v31 = vld [vmem:[%s2005_s18 + $0x640] sm:$0xff] }
 0x198   : > { %v1425_v52 = vadd.f32 %v1424_v47, %v1170_v41  ;;  %v929_v41 = vsub.f32 %v417_v34, %v673_v35  ;;  %v1184_v47 = vand.u32 2147483647, %v928_v36  ;;  %v430_v35 = vld [vmem:[%s1998_s20 + $0x648] sm:$0xff] }
 0x199   : > { %v686_v36 = vld [vmem:[%s2005_s18 + $0x648] sm:$0xff] }
 0x19a   : > { %v1426_v57 = vadd.f32 %v1425_v52, %v1171_v46  ;;  %v930_v46 = vsub.f32 %v418_v39, %v674_v40  ;;  %v1185_v52 = vand.u32 2147483647, %v929_v41  ;;  %v431_v40 = vld [vmem:[%s1998_s20 + $0x650] sm:$0xff] }
 0x19b   : > { %v687_v41 = vld [vmem:[%s2005_s18 + $0x650] sm:$0xff] }
 0x19c   : > { %v1427_v62 = vadd.f32 %v1426_v57, %v1172_v51  ;;  %v931_v51 = vsub.f32 %v419_v44, %v675_v45  ;;  %v1186_v57 = vand.u32 2147483647, %v930_v46  ;;  %v432_v45 = vld [vmem:[%s1998_s20 + $0x658] sm:$0xff] }
 0x19d   : > { %v688_v46 = vld [vmem:[%s2005_s18 + $0x658] sm:$0xff] }
 0x19e   : > { %v1428_v3 = vadd.f32 %v1427_v62, %v1173_v56  ;;  %v932_v56 = vsub.f32 %v420_v49, %v676_v50  ;;  %v1187_v62 = vand.u32 2147483647, %v931_v51  ;;  %v433_v50 = vld [vmem:[%s1998_s20 + $0x660] sm:$0xff] }
 0x19f   : > { %v689_v51 = vld [vmem:[%s2005_s18 + $0x660] sm:$0xff] }
 0x1a0   : > { %v1429_v8 = vadd.f32 %v1428_v3, %v1174_v61  ;;  %v933_v61 = vsub.f32 %v421_v54, %v677_v55  ;;  %v1188_v3 = vand.u32 2147483647, %v932_v56  ;;  %v434_v55 = vld [vmem:[%s1998_s20 + $0x668] sm:$0xff] }
 0x1a1   : > { %v690_v56 = vld [vmem:[%s2005_s18 + $0x668] sm:$0xff] }
 0x1a2   : > { %v1430_v13 = vadd.f32 %v1429_v8, %v1175_v2  ;;  %v934_v2 = vsub.f32 %v422_v59, %v678_v60  ;;  %v1189_v8 = vand.u32 2147483647, %v933_v61  ;;  %v435_v60 = vld [vmem:[%s1998_s20 + $0x670] sm:$0xff] }
 0x1a3   : > { %v691_v61 = vld [vmem:[%s2005_s18 + $0x670] sm:$0xff] }
 0x1a4   : > { %v1431_v18 = vadd.f32 %v1430_v13, %v1176_v7  ;;  %v935_v7 = vsub.f32 %v423_v0, %v679_v1  ;;  %v1190_v13 = vand.u32 2147483647, %v934_v2  ;;  %v436_v1 = vld [vmem:[%s1998_s20 + $0x678] sm:$0xff] }
 0x1a5   : > { %v692_v2 = vld [vmem:[%s2005_s18 + $0x678] sm:$0xff] }
 0x1a6   : > { %v1432_v23 = vadd.f32 %v1431_v18, %v1177_v12  ;;  %v936_v12 = vsub.f32 %v424_v5, %v680_v6  ;;  %v1191_v18 = vand.u32 2147483647, %v935_v7  ;;  %v437_v6 = vld [vmem:[%s1998_s20 + $0x680] sm:$0xff] }
 0x1a7   : > { %v693_v7 = vld [vmem:[%s2005_s18 + $0x680] sm:$0xff] }
 0x1a8   : > { %v1433_v28 = vadd.f32 %v1432_v23, %v1178_v17  ;;  %v937_v17 = vsub.f32 %v425_v10, %v681_v11  ;;  %v1192_v23 = vand.u32 2147483647, %v936_v12  ;;  %v438_v11 = vld [vmem:[%s1998_s20 + $0x688] sm:$0xff] }
 0x1a9   : > { %v694_v12 = vld [vmem:[%s2005_s18 + $0x688] sm:$0xff] }
 0x1aa   : > { %v1434_v33 = vadd.f32 %v1433_v28, %v1179_v22  ;;  %v938_v22 = vsub.f32 %v426_v15, %v682_v16  ;;  %v1193_v28 = vand.u32 2147483647, %v937_v17  ;;  %v439_v16 = vld [vmem:[%s1998_s20 + $0x690] sm:$0xff] }
 0x1ab   : > { %v695_v17 = vld [vmem:[%s2005_s18 + $0x690] sm:$0xff] }
 0x1ac   : > { %v1435_v38 = vadd.f32 %v1434_v33, %v1180_v27  ;;  %v939_v27 = vsub.f32 %v427_v20, %v683_v21  ;;  %v1194_v33 = vand.u32 2147483647, %v938_v22  ;;  %v440_v21 = vld [vmem:[%s1998_s20 + $0x698] sm:$0xff] }
 0x1ad   : > { %v696_v22 = vld [vmem:[%s2005_s18 + $0x698] sm:$0xff] }
 0x1ae   : > { %v1436_v43 = vadd.f32 %v1435_v38, %v1181_v32  ;;  %v940_v32 = vsub.f32 %v428_v25, %v684_v26  ;;  %v1195_v38 = vand.u32 2147483647, %v939_v27  ;;  %v441_v26 = vld [vmem:[%s1998_s20 + $0x6a0] sm:$0xff] }
 0x1af   : > { %v697_v27 = vld [vmem:[%s2005_s18 + $0x6a0] sm:$0xff] }
 0x1b0   : > { %v1437_v48 = vadd.f32 %v1436_v43, %v1182_v37  ;;  %v941_v37 = vsub.f32 %v429_v30, %v685_v31  ;;  %v1196_v43 = vand.u32 2147483647, %v940_v32  ;;  %v442_v31 = vld [vmem:[%s1998_s20 + $0x6a8] sm:$0xff] }
 0x1b1   : > { %v698_v32 = vld [vmem:[%s2005_s18 + $0x6a8] sm:$0xff] }
 0x1b2   : > { %v1438_v53 = vadd.f32 %v1437_v48, %v1183_v42  ;;  %v942_v42 = vsub.f32 %v430_v35, %v686_v36  ;;  %v1197_v48 = vand.u32 2147483647, %v941_v37  ;;  %v443_v36 = vld [vmem:[%s1998_s20 + $0x6b0] sm:$0xff] }
 0x1b3   : > { %v699_v37 = vld [vmem:[%s2005_s18 + $0x6b0] sm:$0xff] }
 0x1b4   : > { %v1439_v58 = vadd.f32 %v1438_v53, %v1184_v47  ;;  %v943_v47 = vsub.f32 %v431_v40, %v687_v41  ;;  %v1198_v53 = vand.u32 2147483647, %v942_v42  ;;  %v444_v41 = vld [vmem:[%s1998_s20 + $0x6b8] sm:$0xff] }
 0x1b5   : > { %v700_v42 = vld [vmem:[%s2005_s18 + $0x6b8] sm:$0xff] }
 0x1b6   : > { %v1440_v63 = vadd.f32 %v1439_v58, %v1185_v52  ;;  %v944_v52 = vsub.f32 %v432_v45, %v688_v46  ;;  %v1199_v58 = vand.u32 2147483647, %v943_v47  ;;  %v445_v46 = vld [vmem:[%s1998_s20 + $0x6c0] sm:$0xff] }
 0x1b7   : > { %v701_v47 = vld [vmem:[%s2005_s18 + $0x6c0] sm:$0xff] }
 0x1b8   : > { %v1441_v4 = vadd.f32 %v1440_v63, %v1186_v57  ;;  %v945_v57 = vsub.f32 %v433_v50, %v689_v51  ;;  %v1200_v63 = vand.u32 2147483647, %v944_v52  ;;  %v446_v51 = vld [vmem:[%s1998_s20 + $0x6c8] sm:$0xff] }
 0x1b9   : > { %v702_v52 = vld [vmem:[%s2005_s18 + $0x6c8] sm:$0xff] }
 0x1ba   : > { %v1442_v9 = vadd.f32 %v1441_v4, %v1187_v62  ;;  %v946_v62 = vsub.f32 %v434_v55, %v690_v56  ;;  %v1201_v4 = vand.u32 2147483647, %v945_v57  ;;  %v447_v56 = vld [vmem:[%s1998_s20 + $0x6d0] sm:$0xff] }
 0x1bb   : > { %v703_v57 = vld [vmem:[%s2005_s18 + $0x6d0] sm:$0xff] }
 0x1bc   : > { %v1443_v14 = vadd.f32 %v1442_v9, %v1188_v3  ;;  %v947_v3 = vsub.f32 %v435_v60, %v691_v61  ;;  %v1202_v9 = vand.u32 2147483647, %v946_v62  ;;  %v448_v61 = vld [vmem:[%s1998_s20 + $0x6d8] sm:$0xff] }
 0x1bd   : > { %v704_v62 = vld [vmem:[%s2005_s18 + $0x6d8] sm:$0xff] }
 0x1be   : > { %v1444_v19 = vadd.f32 %v1443_v14, %v1189_v8  ;;  %v948_v8 = vsub.f32 %v436_v1, %v692_v2  ;;  %v1203_v14 = vand.u32 2147483647, %v947_v3  ;;  %v449_v2 = vld [vmem:[%s1998_s20 + $0x6e0] sm:$0xff] }
 0x1bf   : > { %v705_v3 = vld [vmem:[%s2005_s18 + $0x6e0] sm:$0xff] }
 0x1c0   : > { %v1445_v24 = vadd.f32 %v1444_v19, %v1190_v13  ;;  %v949_v13 = vsub.f32 %v437_v6, %v693_v7  ;;  %v1204_v19 = vand.u32 2147483647, %v948_v8  ;;  %v450_v7 = vld [vmem:[%s1998_s20 + $0x6e8] sm:$0xff] }
 0x1c1   : > { %v706_v8 = vld [vmem:[%s2005_s18 + $0x6e8] sm:$0xff] }
 0x1c2   : > { %v1446_v29 = vadd.f32 %v1445_v24, %v1191_v18  ;;  %v950_v18 = vsub.f32 %v438_v11, %v694_v12  ;;  %v1205_v24 = vand.u32 2147483647, %v949_v13  ;;  %v451_v12 = vld [vmem:[%s1998_s20 + $0x6f0] sm:$0xff] }
 0x1c3   : > { %v707_v13 = vld [vmem:[%s2005_s18 + $0x6f0] sm:$0xff] }
 0x1c4   : > { %v1447_v34 = vadd.f32 %v1446_v29, %v1192_v23  ;;  %v951_v23 = vsub.f32 %v439_v16, %v695_v17  ;;  %v1206_v29 = vand.u32 2147483647, %v950_v18  ;;  %v452_v17 = vld [vmem:[%s1998_s20 + $0x6f8] sm:$0xff] }
 0x1c5   : > { %v708_v18 = vld [vmem:[%s2005_s18 + $0x6f8] sm:$0xff] }
 0x1c6   : > { %v1448_v39 = vadd.f32 %v1447_v34, %v1193_v28  ;;  %v952_v28 = vsub.f32 %v440_v21, %v696_v22  ;;  %v1207_v34 = vand.u32 2147483647, %v951_v23  ;;  %v453_v22 = vld [vmem:[%s1998_s20 + $0x700] sm:$0xff] }
 0x1c7   : > { %v709_v23 = vld [vmem:[%s2005_s18 + $0x700] sm:$0xff] }
 0x1c8   : > { %v1449_v44 = vadd.f32 %v1448_v39, %v1194_v33  ;;  %v953_v33 = vsub.f32 %v441_v26, %v697_v27  ;;  %v1208_v39 = vand.u32 2147483647, %v952_v28  ;;  %v454_v27 = vld [vmem:[%s1998_s20 + $0x708] sm:$0xff] }
 0x1c9   : > { %v710_v28 = vld [vmem:[%s2005_s18 + $0x708] sm:$0xff] }
 0x1ca   : > { %v1450_v49 = vadd.f32 %v1449_v44, %v1195_v38  ;;  %v954_v38 = vsub.f32 %v442_v31, %v698_v32  ;;  %v1209_v44 = vand.u32 2147483647, %v953_v33  ;;  %v455_v32 = vld [vmem:[%s1998_s20 + $0x710] sm:$0xff] }
 0x1cb   : > { %v711_v33 = vld [vmem:[%s2005_s18 + $0x710] sm:$0xff] }
 0x1cc   : > { %v1451_v54 = vadd.f32 %v1450_v49, %v1196_v43  ;;  %v955_v43 = vsub.f32 %v443_v36, %v699_v37  ;;  %v1210_v49 = vand.u32 2147483647, %v954_v38  ;;  %v456_v37 = vld [vmem:[%s1998_s20 + $0x718] sm:$0xff] }
 0x1cd   : > { %v712_v38 = vld [vmem:[%s2005_s18 + $0x718] sm:$0xff] }
 0x1ce   : > { %v1452_v59 = vadd.f32 %v1451_v54, %v1197_v48  ;;  %v956_v48 = vsub.f32 %v444_v41, %v700_v42  ;;  %v1211_v54 = vand.u32 2147483647, %v955_v43  ;;  %v457_v42 = vld [vmem:[%s1998_s20 + $0x720] sm:$0xff] }
 0x1cf   : > { %v713_v43 = vld [vmem:[%s2005_s18 + $0x720] sm:$0xff] }
 0x1d0   : > { %v1453_v0 = vadd.f32 %v1452_v59, %v1198_v53  ;;  %v957_v53 = vsub.f32 %v445_v46, %v701_v47  ;;  %v1212_v59 = vand.u32 2147483647, %v956_v48  ;;  %v458_v47 = vld [vmem:[%s1998_s20 + $0x728] sm:$0xff] }
 0x1d1   : > { %v714_v48 = vld [vmem:[%s2005_s18 + $0x728] sm:$0xff] }
 0x1d2   : > { %v1454_v5 = vadd.f32 %v1453_v0, %v1199_v58  ;;  %v958_v58 = vsub.f32 %v446_v51, %v702_v52  ;;  %v1213_v0 = vand.u32 2147483647, %v957_v53  ;;  %v459_v52 = vld [vmem:[%s1998_s20 + $0x730] sm:$0xff] }
 0x1d3   : > { %v715_v53 = vld [vmem:[%s2005_s18 + $0x730] sm:$0xff] }
 0x1d4   : > { %v1455_v10 = vadd.f32 %v1454_v5, %v1200_v63  ;;  %v959_v63 = vsub.f32 %v447_v56, %v703_v57  ;;  %v1214_v5 = vand.u32 2147483647, %v958_v58  ;;  %v460_v57 = vld [vmem:[%s1998_s20 + $0x738] sm:$0xff] }
 0x1d5   : > { %v716_v58 = vld [vmem:[%s2005_s18 + $0x738] sm:$0xff] }
 0x1d6   : > { %v1456_v15 = vadd.f32 %v1455_v10, %v1201_v4  ;;  %v960_v4 = vsub.f32 %v448_v61, %v704_v62  ;;  %v1215_v10 = vand.u32 2147483647, %v959_v63  ;;  %v461_v62 = vld [vmem:[%s1998_s20 + $0x740] sm:$0xff] }
 0x1d7   : > { %v717_v63 = vld [vmem:[%s2005_s18 + $0x740] sm:$0xff] }
 0x1d8   : > { %v1457_v20 = vadd.f32 %v1456_v15, %v1202_v9  ;;  %v961_v9 = vsub.f32 %v449_v2, %v705_v3  ;;  %v1216_v15 = vand.u32 2147483647, %v960_v4  ;;  %v462_v3 = vld [vmem:[%s1998_s20 + $0x748] sm:$0xff] }
 0x1d9   : > { %v718_v4 = vld [vmem:[%s2005_s18 + $0x748] sm:$0xff] }
 0x1da   : > { %v1458_v25 = vadd.f32 %v1457_v20, %v1203_v14  ;;  %v962_v14 = vsub.f32 %v450_v7, %v706_v8  ;;  %v1217_v20 = vand.u32 2147483647, %v961_v9  ;;  %v463_v8 = vld [vmem:[%s1998_s20 + $0x750] sm:$0xff] }
 0x1db   : > { %v719_v9 = vld [vmem:[%s2005_s18 + $0x750] sm:$0xff] }
 0x1dc   : > { %v1459_v30 = vadd.f32 %v1458_v25, %v1204_v19  ;;  %v963_v19 = vsub.f32 %v451_v12, %v707_v13  ;;  %v1218_v25 = vand.u32 2147483647, %v962_v14  ;;  %v464_v13 = vld [vmem:[%s1998_s20 + $0x758] sm:$0xff] }
 0x1dd   : > { %v720_v14 = vld [vmem:[%s2005_s18 + $0x758] sm:$0xff] }
 0x1de   : > { %v1460_v35 = vadd.f32 %v1459_v30, %v1205_v24  ;;  %v964_v24 = vsub.f32 %v452_v17, %v708_v18  ;;  %v1219_v30 = vand.u32 2147483647, %v963_v19  ;;  %v465_v18 = vld [vmem:[%s1998_s20 + $0x760] sm:$0xff] }
 0x1df   : > { %v721_v19 = vld [vmem:[%s2005_s18 + $0x760] sm:$0xff] }
 0x1e0   : > { %v1461_v40 = vadd.f32 %v1460_v35, %v1206_v29  ;;  %v965_v29 = vsub.f32 %v453_v22, %v709_v23  ;;  %v1220_v35 = vand.u32 2147483647, %v964_v24  ;;  %v466_v23 = vld [vmem:[%s1998_s20 + $0x768] sm:$0xff] }
 0x1e1   : > { %v722_v24 = vld [vmem:[%s2005_s18 + $0x768] sm:$0xff] }
 0x1e2   : > { %v1462_v45 = vadd.f32 %v1461_v40, %v1207_v34  ;;  %v966_v34 = vsub.f32 %v454_v27, %v710_v28  ;;  %v1221_v40 = vand.u32 2147483647, %v965_v29  ;;  %v467_v28 = vld [vmem:[%s1998_s20 + $0x770] sm:$0xff] }
 0x1e3   : > { %v723_v29 = vld [vmem:[%s2005_s18 + $0x770] sm:$0xff] }
 0x1e4   : > { %v1463_v50 = vadd.f32 %v1462_v45, %v1208_v39  ;;  %v967_v39 = vsub.f32 %v455_v32, %v711_v33  ;;  %v1222_v45 = vand.u32 2147483647, %v966_v34  ;;  %v468_v33 = vld [vmem:[%s1998_s20 + $0x778] sm:$0xff] }
 0x1e5   : > { %v724_v34 = vld [vmem:[%s2005_s18 + $0x778] sm:$0xff] }
 0x1e6   : > { %v1464_v55 = vadd.f32 %v1463_v50, %v1209_v44  ;;  %v968_v44 = vsub.f32 %v456_v37, %v712_v38  ;;  %v1223_v50 = vand.u32 2147483647, %v967_v39  ;;  %v469_v38 = vld [vmem:[%s1998_s20 + $0x780] sm:$0xff] }
 0x1e7   : > { %v725_v39 = vld [vmem:[%s2005_s18 + $0x780] sm:$0xff] }
 0x1e8   : > { %v1465_v60 = vadd.f32 %v1464_v55, %v1210_v49  ;;  %v969_v49 = vsub.f32 %v457_v42, %v713_v43  ;;  %v1224_v55 = vand.u32 2147483647, %v968_v44  ;;  %v470_v43 = vld [vmem:[%s1998_s20 + $0x788] sm:$0xff] }
 0x1e9   : > { %v726_v44 = vld [vmem:[%s2005_s18 + $0x788] sm:$0xff] }
 0x1ea   : > { %v1466_v1 = vadd.f32 %v1465_v60, %v1211_v54  ;;  %v970_v54 = vsub.f32 %v458_v47, %v714_v48  ;;  %v1225_v60 = vand.u32 2147483647, %v969_v49  ;;  %v471_v48 = vld [vmem:[%s1998_s20 + $0x790] sm:$0xff] }
 0x1eb   : > { %v727_v49 = vld [vmem:[%s2005_s18 + $0x790] sm:$0xff] }
 0x1ec   : > { %v1467_v6 = vadd.f32 %v1466_v1, %v1212_v59  ;;  %v971_v59 = vsub.f32 %v459_v52, %v715_v53  ;;  %v1226_v1 = vand.u32 2147483647, %v970_v54  ;;  %v472_v53 = vld [vmem:[%s1998_s20 + $0x798] sm:$0xff] }
 0x1ed   : > { %v728_v54 = vld [vmem:[%s2005_s18 + $0x798] sm:$0xff] }
 0x1ee   : > { %v1468_v11 = vadd.f32 %v1467_v6, %v1213_v0  ;;  %v972_v0 = vsub.f32 %v460_v57, %v716_v58  ;;  %v1227_v6 = vand.u32 2147483647, %v971_v59  ;;  %v473_v58 = vld [vmem:[%s1998_s20 + $0x7a0] sm:$0xff] }
 0x1ef   : > { %v729_v59 = vld [vmem:[%s2005_s18 + $0x7a0] sm:$0xff] }
 0x1f0   : > { %v1469_v16 = vadd.f32 %v1468_v11, %v1214_v5  ;;  %v973_v5 = vsub.f32 %v461_v62, %v717_v63  ;;  %v1228_v11 = vand.u32 2147483647, %v972_v0  ;;  %v474_v63 = vld [vmem:[%s1998_s20 + $0x7a8] sm:$0xff] }
 0x1f1   : > { %v730_v0 = vld [vmem:[%s2005_s18 + $0x7a8] sm:$0xff] }
 0x1f2   : > { %v1470_v21 = vadd.f32 %v1469_v16, %v1215_v10  ;;  %v974_v10 = vsub.f32 %v462_v3, %v718_v4  ;;  %v1229_v16 = vand.u32 2147483647, %v973_v5  ;;  %v475_v4 = vld [vmem:[%s1998_s20 + $0x7b0] sm:$0xff] }
 0x1f3   : > { %v731_v5 = vld [vmem:[%s2005_s18 + $0x7b0] sm:$0xff] }
 0x1f4   : > { %v1471_v26 = vadd.f32 %v1470_v21, %v1216_v15  ;;  %v975_v15 = vsub.f32 %v463_v8, %v719_v9  ;;  %v1230_v21 = vand.u32 2147483647, %v974_v10  ;;  %v476_v9 = vld [vmem:[%s1998_s20 + $0x7b8] sm:$0xff] }
 0x1f5   : > { %v732_v10 = vld [vmem:[%s2005_s18 + $0x7b8] sm:$0xff] }
 0x1f6   : > { %v1472_v31 = vadd.f32 %v1471_v26, %v1217_v20  ;;  %v976_v20 = vsub.f32 %v464_v13, %v720_v14  ;;  %v1231_v26 = vand.u32 2147483647, %v975_v15  ;;  %v477_v14 = vld [vmem:[%s1998_s20 + $0x7c0] sm:$0xff] }
 0x1f7   : > { %v733_v15 = vld [vmem:[%s2005_s18 + $0x7c0] sm:$0xff] }
 0x1f8   : > { %v1473_v36 = vadd.f32 %v1472_v31, %v1218_v25  ;;  %v977_v25 = vsub.f32 %v465_v18, %v721_v19  ;;  %v1232_v31 = vand.u32 2147483647, %v976_v20  ;;  %v478_v19 = vld [vmem:[%s1998_s20 + $0x7c8] sm:$0xff] }
 0x1f9   : > { %v734_v20 = vld [vmem:[%s2005_s18 + $0x7c8] sm:$0xff] }
 0x1fa   : > { %v1474_v41 = vadd.f32 %v1473_v36, %v1219_v30  ;;  %v978_v30 = vsub.f32 %v466_v23, %v722_v24  ;;  %v1233_v36 = vand.u32 2147483647, %v977_v25  ;;  %v479_v24 = vld [vmem:[%s1998_s20 + $0x7d0] sm:$0xff] }
 0x1fb   : > { %v735_v25 = vld [vmem:[%s2005_s18 + $0x7d0] sm:$0xff] }
 0x1fc   : > { %v1475_v46 = vadd.f32 %v1474_v41, %v1220_v35  ;;  %v979_v35 = vsub.f32 %v467_v28, %v723_v29  ;;  %v1234_v41 = vand.u32 2147483647, %v978_v30  ;;  %v480_v29 = vld [vmem:[%s1998_s20 + $0x7d8] sm:$0xff] }
 0x1fd   : > { %v736_v30 = vld [vmem:[%s2005_s18 + $0x7d8] sm:$0xff] }
 0x1fe   : > { %v1476_v51 = vadd.f32 %v1475_v46, %v1221_v40  ;;  %v980_v40 = vsub.f32 %v468_v33, %v724_v34  ;;  %v1235_v46 = vand.u32 2147483647, %v979_v35  ;;  %v481_v34 = vld [vmem:[%s1998_s20 + $0x7e0] sm:$0xff] }
 0x1ff   : > { %v737_v35 = vld [vmem:[%s2005_s18 + $0x7e0] sm:$0xff] }
 0x200   : > { %v1477_v56 = vadd.f32 %v1476_v51, %v1222_v45  ;;  %v981_v45 = vsub.f32 %v469_v38, %v725_v39  ;;  %v1236_v51 = vand.u32 2147483647, %v980_v40  ;;  %v482_v39 = vld [vmem:[%s1998_s20 + $0x7e8] sm:$0xff] }
 0x201   : > { %v738_v40 = vld [vmem:[%s2005_s18 + $0x7e8] sm:$0xff] }
 0x202   : > { %v1478_v61 = vadd.f32 %v1477_v56, %v1223_v50  ;;  %v982_v50 = vsub.f32 %v470_v43, %v726_v44  ;;  %v1237_v56 = vand.u32 2147483647, %v981_v45  ;;  %v483_v44 = vld [vmem:[%s1998_s20 + $0x7f0] sm:$0xff] }
 0x203   : > { %v739_v45 = vld [vmem:[%s2005_s18 + $0x7f0] sm:$0xff] }
 0x204   : > { %v1479_v2 = vadd.f32 %v1478_v61, %v1224_v55  ;;  %v983_v55 = vsub.f32 %v471_v48, %v727_v49  ;;  %v1238_v61 = vand.u32 2147483647, %v982_v50  ;;  %v484_v49 = vld [vmem:[%s1998_s20 + $0x7f8] sm:$0xff] }
 0x205   : > { %v740_v50 = vld [vmem:[%s2005_s18 + $0x7f8] sm:$0xff] }
 0x206   : > { %v1480_v7 = vadd.f32 %v1479_v2, %v1225_v60  ;;  %v984_v60 = vsub.f32 %v472_v53, %v728_v54  ;;  %v1239_v2 = vand.u32 2147483647, %v983_v55  ;;  %v996_v54 = vsub.f32 %v484_v49, %v740_v50 }
 0x208   : > { %v1481_v12 = vadd.f32 %v1480_v7, %v1226_v1  ;;  %v985_v1 = vsub.f32 %v473_v58, %v729_v59  ;;  %v1240_v7 = vand.u32 2147483647, %v984_v60  ;;  %v1252_v59 = vand.u32 2147483647, %v996_v54 }
 0x20a   : > { %v1482_v17 = vadd.f32 %v1481_v12, %v1227_v6  ;;  %v986_v6 = vsub.f32 %v474_v63, %v730_v0  ;;  %v1241_v12 = vand.u32 2147483647, %v985_v1 }
 0x20c   : > { %v1483_v22 = vadd.f32 %v1482_v17, %v1228_v11  ;;  %v987_v11 = vsub.f32 %v475_v4, %v731_v5  ;;  %v1242_v17 = vand.u32 2147483647, %v986_v6 }
 0x20e   : > { %v1484_v27 = vadd.f32 %v1483_v22, %v1229_v16  ;;  %v988_v16 = vsub.f32 %v476_v9, %v732_v10  ;;  %v1243_v22 = vand.u32 2147483647, %v987_v11 }
 0x210   : > { %v1485_v32 = vadd.f32 %v1484_v27, %v1230_v21  ;;  %v989_v21 = vsub.f32 %v477_v14, %v733_v15  ;;  %v1244_v27 = vand.u32 2147483647, %v988_v16 }
 0x212   : > { %v1486_v37 = vadd.f32 %v1485_v32, %v1231_v26  ;;  %v990_v26 = vsub.f32 %v478_v19, %v734_v20  ;;  %v1245_v32 = vand.u32 2147483647, %v989_v21 }
 0x214   : > { %v1487_v42 = vadd.f32 %v1486_v37, %v1232_v31  ;;  %v991_v31 = vsub.f32 %v479_v24, %v735_v25  ;;  %v1246_v37 = vand.u32 2147483647, %v990_v26 }
 0x216   : > { %v1488_v47 = vadd.f32 %v1487_v42, %v1233_v36  ;;  %v992_v36 = vsub.f32 %v480_v29, %v736_v30  ;;  %v1247_v42 = vand.u32 2147483647, %v991_v31 }
 0x218   : > { %v1489_v52 = vadd.f32 %v1488_v47, %v1234_v41  ;;  %v993_v41 = vsub.f32 %v481_v34, %v737_v35  ;;  %v1248_v47 = vand.u32 2147483647, %v992_v36 }
 0x21a   : > { %v1490_v57 = vadd.f32 %v1489_v52, %v1235_v46  ;;  %v994_v46 = vsub.f32 %v482_v39, %v738_v40  ;;  %v1249_v52 = vand.u32 2147483647, %v993_v41 }
 0x21c   : > { %v1491_v62 = vadd.f32 %v1490_v57, %v1236_v51  ;;  %v995_v51 = vsub.f32 %v483_v44, %v739_v45  ;;  %v1250_v55 = vand.u32 2147483647, %v994_v46 }
 0x21e   : > { %v1492_v3 = vadd.f32 %v1491_v62, %v1237_v56  ;;  %v1251_v57 = vand.u32 2147483647, %v995_v51 }
 0x220   : > { %v1493_v8 = vadd.f32 %v1492_v3, %v1238_v61 }
 0x222   : > { %v1494_v13 = vadd.f32 %v1493_v8, %v1239_v2 }
 0x224   : > { %v1495_v18 = vadd.f32 %v1494_v13, %v1240_v7 }
 0x226   : > { %v1496_v23 = vadd.f32 %v1495_v18, %v1241_v12 }
 0x228   : > { %v1497_v28 = vadd.f32 %v1496_v23, %v1242_v17 }
 0x22a   : > { %v1498_v33 = vadd.f32 %v1497_v28, %v1243_v22 }
 0x22c   : > { %v1499_v38 = vadd.f32 %v1498_v33, %v1244_v27 }
 0x22e   : > { %v1500_v43 = vadd.f32 %v1499_v38, %v1245_v32 }
 0x230   : > { %v1501_v48 = vadd.f32 %v1500_v43, %v1246_v37 }
 0x232   : > { %v1502_v53 = vadd.f32 %v1501_v48, %v1247_v42 }
 0x234   : > { %v1503_v56 = vadd.f32 %v1502_v53, %v1248_v47 }
 0x236   : > { %v1504_v58 = vadd.f32 %v1503_v56, %v1249_v52 }
 0x238   : > { %v1505_v60 = vadd.f32 %v1504_v58, %v1250_v55 }
 0x23a   : > { %v1506_v61 = vadd.f32 %v1505_v60, %v1251_v57 }
 0x23c   : > { %v1507_v62 = vadd.f32 %v1506_v61, %v1252_v59 }
 0x23e   : > { %1510 = vst [vmem:[%s219_s28] sm:$0xff] %v1507_v62 }
 0x23f   : > { %1787 = shalt.err (!%p1784_p7)
}
 0x240   : > { %s1788_s12 = scalar_lea.hbm %s1523_s8, 128  ;;  %s1792_s6 = scalar_lea.hbm %s2566_s2, 256 }
 0x241   : > { %p1789_p10 = scmp.ne.s32.totalorder %s1523_s8, %s1788_s12  ;;  %p1793_p3 = scmp.lt.s32.totalorder %s1523_s8, %s2566_s2 }
 0x242   : > { %p1794_p8 = scmp.lt.s32.totalorder %s1792_s6, %s1788_s12 }
 0x243   : > { %p1790_p1 = pnand %p1789_p10, %p1931_p9 }
 0x244   : > { %p1795_p0 = por %p1794_p8, %p1793_p3 }
 0x245   : > { %p1791_p13 = pneg %p1790_p1 }
 0x247   : > { %p1796_p12 = pnand %p1795_p0, %p1791_p13 }
 0x249   : > { %1799 = shalt.err (!%p1796_p12)
}
 0x24a   : > { %1652 = dma.vmem_to_hbm [thread:$0]  (%p1931_p9), %s1526_s29, 128, %s1523_s8, %s1512_s15  }
 0x24b PF: > { %s1537_s18 = sand.u32 1, %s1838_s9   ;;  %p2573_p2 = scmp.ge.s32.totalorder %s1858_s14, 2 }
 0x24c   : > { %s1538_s21 = scalar_lea.sflag [#allocation4], %s1537_s18 }
 0x24d   : > { %p1662_p5 = pnand %p2573_p2, %p1938_p11 }
 0x24f   : > { %p1663_p6 = pneg %p1662_p5 }
 0x251   : > { %1833 = dma.done.wait (%p1663_p6), %s1538_s21, 128  }
 0x252   : > { %1835 = vsyncadd (%p1663_p6), %s1538_s21, 4294967168  ;;  %s21_s14 = sadd.s32 1, %s1858_s14   ;;  %s2574_s9 = smov %s1842_s10 }
 0x253   : > { %p18_p4 = scmp.ge.s32.totalorder %s21_s14, 4   ;;  %s2575_s10 = smov %s1846_s11 }
 0x254   : > { %s2576_s11 = smov %s1936_s23  ;;  %s2577_s12 = smov %s1854_s13 }
 0x255   : > { %s2578_s13 = smov %s2580_s17  ;;  %20 = sbr.rel (!%p18_p4) target bundleno = 8 (0x8), region = 90 }
 0x25a   :  { %1543 = vsyncpa [#allocation3], 1 }
 0x25b   :  { %1545 = vsyncpa [#allocation3 + $0x1], 1 }
 0x25c   :  { %1546 = vsyncpa [#allocation6], 1 }
 0x25d   :  { %1548 = vsyncpa [#allocation6 + $0x1], 1 }
 0x25e   :  { %1549 = vsyncpa [#allocation4], 1 }
 0x25f   :  { %1551 = vsyncpa [#allocation4 + $0x1], 1 }

</bundles_post_ra>
